<compile_context>
chip_gen: v7x
topology: tpu7x:2x2x1
jax: 0.10.0
libtpu: 0.0.40
codegen_flags: <defaults>
</compile_context>

<pallas_src>
import functools

import jax
import jax.numpy as jnp
from jax import lax
from jax.experimental import pallas as pl
from jax.experimental.pallas import tpu as pltpu


def _doubleconv_kernel(x_ref, w1_ref, b1_ref, w2_ref, b2_ref, mask_ref, o_ref,
                       ypad_ref, *, H, W, negative_slope):
    # x_ref:   (1, Cin, (H+3)*(W+2))  bf16  zero-padded, row-flattened image
    # w1_ref:  (9, Cout, Cin)         bf16  conv1 taps (t = kh*3 + kw)
    # b1_ref:  (Cout, 1)              f32
    # w2_ref:  (9, Cout, Cout)        bf16  conv2 taps
    # b2_ref:  (Cout, 1)              f32
    # mask_ref:(1, H*(W+2))           f32   1.0 on valid cols, 0.0 on junk cols
    # o_ref:   (1, Cout, H*(W+2))     f32   lane-dense output slab
    # ypad_ref:(Cout, (H+3)*(W+2))    bf16  zero-padded conv1 activation (VMEM)
    Wp = W + 2
    HWp = H * Wp
    cout = w2_ref.shape[1]

    def leaky(v):
        return jnp.where(v >= 0, v, negative_slope * v)

    def conv3x3(src_ref, w_ref, b_ref):
        # src_ref: (C, (H+3)*Wp) zero-padded flattened image in VMEM.
        # 9 accumulating MXU matmuls; RHS is an in-place lane-shifted slice
        # (no materialized im2col); f32 accumulation.
        acc = jnp.zeros((cout, HWp), jnp.float32)
        for kh in range(3):
            for kw in range(3):
                t = kh * 3 + kw
                rhs = src_ref[:, pl.ds(kh * Wp + kw, HWp)]
                acc = acc + jnp.dot(w_ref[t], rhs,
                                    preferred_element_type=jnp.float32)
        return leaky(acc + b_ref[...])

    # ---- conv1 + LeakyReLU: padded input read in place (no copy) ----
    y1 = conv3x3(x_ref.at[0], w1_ref, b1_ref)
    # Zero the junk wrap-around columns (w in {W, W+1} of every flattened row)
    # so they double as conv2's left/right zero padding.
    y1 = y1 * mask_ref[...]

    # ---- conv1 activation -> zero-padded VMEM scratch (never hits HBM) ----
    # One contiguous interior store + two tiny border memsets per iteration
    # (kept per-iteration so "parallel" megacore partitioning stays correct).
    ypad_ref[:, pl.ds(0, Wp + 1)] = jnp.zeros((cout, Wp + 1), ypad_ref.dtype)
    ypad_ref[:, pl.ds(Wp + 1, HWp)] = y1.astype(ypad_ref.dtype)
    ypad_ref[:, pl.ds(Wp + 1 + HWp, 2 * Wp - 1)] = jnp.zeros(
        (cout, 2 * Wp - 1), ypad_ref.dtype)

    # ---- conv2 + LeakyReLU ----
    y2 = conv3x3(ypad_ref, w2_ref, b2_ref)
    o_ref[0] = y2.astype(o_ref.dtype)


def inconv_forward(x_nchw, params, negative_slope=0.1):
    """inconv / DoubleConv forward. Input/output NCHW like PyTorch."""
    N, Cin, H, W = x_nchw.shape
    Wp = W + 2
    HWp = H * Wp
    PADF = (H + 3) * Wp        # 1 top pad row, H rows, 1 bottom pad row, 1 slack
    Cout = params["w1"].shape[-1]

    # One-time layout prep in the wrapper. The pad touches only the *input*
    # (the smallest tensor for inconv, Cin<=4) and removes the in-kernel
    # padded-input scratch, its memset, and its per-row copies entirely.
    x_pad = jnp.pad(x_nchw, ((0, 0), (0, 0), (1, 2), (1, 1)))
    x_pad = x_pad.reshape(N, Cin, PADF).astype(jnp.bfloat16)

    # Weights as (9, Cout, Cin): tap t = kh*3 + kw holds W[:, :, kh, kw].
    w1m = jnp.transpose(params["w1"], (0, 1, 3, 2)).reshape(9, Cout, Cin)
    w2m = jnp.transpose(params["w2"], (0, 1, 3, 2)).reshape(9, Cout, Cout)
    w1m = w1m.astype(jnp.bfloat16)
    w2m = w2m.astype(jnp.bfloat16)
    b1 = params["b1"].reshape(Cout, 1).astype(jnp.float32)
    b2 = params["b2"].reshape(Cout, 1).astype(jnp.float32)

    # Lane mask for the junk wrap-around columns of a flattened-row conv.
    mask = (jnp.arange(HWp, dtype=jnp.int32) % Wp) < W
    mask = mask.astype(jnp.float32).reshape(1, HWp)

    kernel = functools.partial(_doubleconv_kernel, H=H, W=W,
                               negative_slope=negative_slope)

    flops = 2 * N * HWp * 9 * (Cin * Cout + Cout * Cout)
    bytes_accessed = (x_pad.size * 2 + w1m.size * 2 + w2m.size * 2
                      + (b1.size + b2.size + mask.size) * 4
                      + N * Cout * HWp * x_nchw.dtype.itemsize)

    out_flat = pl.pallas_call(
        kernel,
        out_shape=jax.ShapeDtypeStruct((N, Cout, HWp), x_nchw.dtype),
        grid_spec=pltpu.PrefetchScalarGridSpec(
            num_scalar_prefetch=0,
            grid=(N,),
            in_specs=[
                pl.BlockSpec((1, Cin, PADF), lambda n: (n, 0, 0)),
                pl.BlockSpec((9, Cout, Cin), lambda n: (0, 0, 0)),
                pl.BlockSpec((Cout, 1), lambda n: (0, 0)),
                pl.BlockSpec((9, Cout, Cout), lambda n: (0, 0, 0)),
                pl.BlockSpec((Cout, 1), lambda n: (0, 0)),
                pl.BlockSpec((1, HWp), lambda n: (0, 0)),
            ],
            out_specs=pl.BlockSpec((1, Cout, HWp), lambda n: (n, 0, 0)),
            scratch_shapes=[
                pltpu.VMEM((Cout, PADF), jnp.bfloat16),   # padded conv1 act
            ],
        ),
        compiler_params=pltpu.CompilerParams(
            dimension_semantics=("parallel",)),
        cost_estimate=pl.CostEstimate(flops=flops, transcendentals=0,
                                      bytes_accessed=bytes_accessed),
    )(x_pad, w1m, b1, w2m, b2, mask)

    # Lane-dense slab -> NCHW (drop the 2 junk columns per flattened row).
    # TODO(synk): once strip-tiled and W % 128 == 0, store compact (H, W)
    # rows directly from the kernel and drop this slice.
    return out_flat.reshape(N, Cout, H, Wp)[:, :, :, :W]


def init_params(key, in_ch, out_ch, k=3, dtype=jnp.float32):
    k1, k2, k3, k4 = jax.random.split(key, 4)
    # Deterministic init roughly matching PyTorch Conv2d default (uniform bound).
    bound1 = 1.0 / (in_ch * k * k) ** 0.5
    bound2 = 1.0 / (out_ch * k * k) ** 0.5
    return {
        # weights stored HWIO
        "w1": jax.random.uniform(k1, (k, k, in_ch, out_ch), dtype, -bound1, bound1),
        "b1": jax.random.uniform(k2, (out_ch,), dtype, -bound1, bound1),
        "w2": jax.random.uniform(k3, (k, k, out_ch, out_ch), dtype, -bound2, bound2),
        "b2": jax.random.uniform(k4, (out_ch,), dtype, -bound2, bound2),
    }


def _reference_forward(x_nchw, params):
    """Pure-JAX f32 reference (lax.conv) to validate the Pallas kernel."""
    def conv(x, w, b):
        w_oihw = jnp.transpose(w, (3, 2, 0, 1))
        y = lax.conv_general_dilated(
            x, w_oihw, window_strides=(1, 1), padding="SAME",
            dimension_numbers=("NCHW", "OIHW", "NCHW"))
        y = y + b[None, :, None, None]
        return jnp.where(y >= 0, y, 0.1 * y)
    x = conv(x_nchw, params["w1"], params["b1"])
    x = conv(x, params["w2"], params["b2"])
    return x


if __name__ == "__main__":
    key = jax.random.PRNGKey(0)
    kx, kp = jax.random.split(key)

    N, Cin, H, W = 2, 4, 16, 16
    Cout = 8

    x = jax.random.normal(kx, (N, Cin, H, W), dtype=jnp.float32)
    params = init_params(kp, Cin, Cout)

    out = inconv_forward(x, params)
    out = jax.block_until_ready(out)

    ref = _reference_forward(x, params)
    assert out.shape == (N, Cout, H, W)
    # bf16 MXU inputs + bf16 conv1 activation (f32 accumulation) vs f32
    # reference -> intentionally loosened tolerance.
    assert jnp.allclose(out, ref, atol=5e-2, rtol=5e-2), "mismatch vs reference"

    print("KERNEL_OK")
</pallas_src>

<mosaic_0001>
module attributes {stable_mosaic.version = 11 : i64} {
  func.func @_doubleconv_kernel(%arg0: i32, %arg1: memref<1x4x342xbf16, #tpu.memory_space<vmem>>, %arg2: memref<9x8x4xbf16, #tpu.memory_space<vmem>>, %arg3: memref<8x1xf32, #tpu.memory_space<vmem>>, %arg4: memref<9x8x8xbf16, #tpu.memory_space<vmem>>, %arg5: memref<8x1xf32, #tpu.memory_space<vmem>>, %arg6: memref<1x288xf32, #tpu.memory_space<vmem>>, %arg7: memref<1x8x288xf32, #tpu.memory_space<vmem>>, %arg8: memref<8x342xbf16, #tpu.memory_space<vmem>>) attributes {dimension_semantics = [#tpu.dimension_semantics<parallel>], iteration_bounds = array<i64: 2>, scalar_prefetch = 0 : i64, scratch_operands = 1 : i64, tpu.core_type = #tpu.core_type<tc>, window_params = [{transform_indices = @transform_0, window_bounds = array<i64: 1, 4, 342>}, {pipeline_mode = #tpu.pipeline_mode<synchronous>, transform_indices = @transform_1, window_bounds = array<i64: 9, 8, 4>}, {pipeline_mode = #tpu.pipeline_mode<synchronous>, transform_indices = @transform_2, window_bounds = array<i64: 8, 1>}, {pipeline_mode = #tpu.pipeline_mode<synchronous>, transform_indices = @transform_3, window_bounds = array<i64: 9, 8, 8>}, {pipeline_mode = #tpu.pipeline_mode<synchronous>, transform_indices = @transform_4, window_bounds = array<i64: 8, 1>}, {pipeline_mode = #tpu.pipeline_mode<synchronous>, transform_indices = @transform_5, window_bounds = array<i64: 1, 288>}, {transform_indices = @transform_6, window_bounds = array<i64: 1, 8, 288>}]} {
    %cst = arith.constant 0.000000e+00 : f32
    %0 = vector.broadcast %cst : f32 to vector<8x288xf32>
    %c0_i32 = arith.constant 0 : i32
    %c0_i32_0 = arith.constant 0 : i32
    %c0_i32_1 = arith.constant 0 : i32
    %1 = tpu.memref_slice %arg1[%c0_i32, %c0_i32_0, %c0_i32_1] : memref<1x4x342xbf16, #tpu.memory_space<vmem>> -> memref<1x4x342xbf16, #tpu.memory_space<vmem>>
    %2 = tpu.memref_squeeze %1 : memref<1x4x342xbf16, #tpu.memory_space<vmem>> -> memref<4x342xbf16, #tpu.memory_space<vmem>>
    %c0 = arith.constant 0 : index
    %c0_2 = arith.constant 0 : index
    %3 = vector.load %2[%c0, %c0_2] : memref<4x342xbf16, #tpu.memory_space<vmem>>, vector<4x288xbf16>
    %c0_3 = arith.constant 0 : index
    %c0_4 = arith.constant 0 : index
    %c0_5 = arith.constant 0 : index
    %4 = vector.load %arg2[%c0_3, %c0_4, %c0_5] : memref<9x8x4xbf16, #tpu.memory_space<vmem>>, vector<1x8x4xbf16>
    %5 = vector.shape_cast %4 : vector<1x8x4xbf16> to vector<8x4xbf16>
    %cst_6 = arith.constant dense<0.000000e+00> : vector<8x288xf32>
    %6 = tpu.matmul %5, %3, %cst_6 {dimension_numbers = #tpu.dot_dimension_numbers<[1], [0], [0], [1], [0, 0, 1, 1], [], []>} : vector<8x4xbf16>, vector<4x288xbf16>, vector<8x288xf32> -> vector<8x288xf32>
    %7 = arith.addf %0, %6 : vector<8x288xf32>
    %c0_i32_7 = arith.constant 0 : i32
    %c0_i32_8 = arith.constant 0 : i32
    %c0_i32_9 = arith.constant 0 : i32
    %8 = tpu.memref_slice %arg1[%c0_i32_7, %c0_i32_8, %c0_i32_9] : memref<1x4x342xbf16, #tpu.memory_space<vmem>> -> memref<1x4x342xbf16, #tpu.memory_space<vmem>>
    %9 = tpu.memref_squeeze %8 : memref<1x4x342xbf16, #tpu.memory_space<vmem>> -> memref<4x342xbf16, #tpu.memory_space<vmem>>
    %c0_10 = arith.constant 0 : index
    %c1 = arith.constant 1 : index
    %10 = vector.load %9[%c0_10, %c1] : memref<4x342xbf16, #tpu.memory_space<vmem>>, vector<4x288xbf16>
    %c1_11 = arith.constant 1 : index
    %c0_12 = arith.constant 0 : index
    %c0_13 = arith.constant 0 : index
    %11 = vector.load %arg2[%c1_11, %c0_12, %c0_13] : memref<9x8x4xbf16, #tpu.memory_space<vmem>>, vector<1x8x4xbf16>
    %12 = vector.shape_cast %11 : vector<1x8x4xbf16> to vector<8x4xbf16>
    %cst_14 = arith.constant dense<0.000000e+00> : vector<8x288xf32>
    %13 = tpu.matmul %12, %10, %cst_14 {dimension_numbers = #tpu.dot_dimension_numbers<[1], [0], [0], [1], [0, 0, 1, 1], [], []>} : vector<8x4xbf16>, vector<4x288xbf16>, vector<8x288xf32> -> vector<8x288xf32>
    %14 = arith.addf %7, %13 : vector<8x288xf32>
    %c0_i32_15 = arith.constant 0 : i32
    %c0_i32_16 = arith.constant 0 : i32
    %c0_i32_17 = arith.constant 0 : i32
    %15 = tpu.memref_slice %arg1[%c0_i32_15, %c0_i32_16, %c0_i32_17] : memref<1x4x342xbf16, #tpu.memory_space<vmem>> -> memref<1x4x342xbf16, #tpu.memory_space<vmem>>
    %16 = tpu.memref_squeeze %15 : memref<1x4x342xbf16, #tpu.memory_space<vmem>> -> memref<4x342xbf16, #tpu.memory_space<vmem>>
    %c0_18 = arith.constant 0 : index
    %c2 = arith.constant 2 : index
    %17 = vector.load %16[%c0_18, %c2] : memref<4x342xbf16, #tpu.memory_space<vmem>>, vector<4x288xbf16>
    %c2_19 = arith.constant 2 : index
    %c0_20 = arith.constant 0 : index
    %c0_21 = arith.constant 0 : index
    %18 = vector.load %arg2[%c2_19, %c0_20, %c0_21] : memref<9x8x4xbf16, #tpu.memory_space<vmem>>, vector<1x8x4xbf16>
    %19 = vector.shape_cast %18 : vector<1x8x4xbf16> to vector<8x4xbf16>
    %cst_22 = arith.constant dense<0.000000e+00> : vector<8x288xf32>
    %20 = tpu.matmul %19, %17, %cst_22 {dimension_numbers = #tpu.dot_dimension_numbers<[1], [0], [0], [1], [0, 0, 1, 1], [], []>} : vector<8x4xbf16>, vector<4x288xbf16>, vector<8x288xf32> -> vector<8x288xf32>
    %21 = arith.addf %14, %20 : vector<8x288xf32>
    %c0_i32_23 = arith.constant 0 : i32
    %c0_i32_24 = arith.constant 0 : i32
    %c0_i32_25 = arith.constant 0 : i32
    %22 = tpu.memref_slice %arg1[%c0_i32_23, %c0_i32_24, %c0_i32_25] : memref<1x4x342xbf16, #tpu.memory_space<vmem>> -> memref<1x4x342xbf16, #tpu.memory_space<vmem>>
    %23 = tpu.memref_squeeze %22 : memref<1x4x342xbf16, #tpu.memory_space<vmem>> -> memref<4x342xbf16, #tpu.memory_space<vmem>>
    %c0_26 = arith.constant 0 : index
    %c18 = arith.constant 18 : index
    %24 = vector.load %23[%c0_26, %c18] : memref<4x342xbf16, #tpu.memory_space<vmem>>, vector<4x288xbf16>
    %c3 = arith.constant 3 : index
    %c0_27 = arith.constant 0 : index
    %c0_28 = arith.constant 0 : index
    %25 = vector.load %arg2[%c3, %c0_27, %c0_28] : memref<9x8x4xbf16, #tpu.memory_space<vmem>>, vector<1x8x4xbf16>
    %26 = vector.shape_cast %25 : vector<1x8x4xbf16> to vector<8x4xbf16>
    %cst_29 = arith.constant dense<0.000000e+00> : vector<8x288xf32>
    %27 = tpu.matmul %26, %24, %cst_29 {dimension_numbers = #tpu.dot_dimension_numbers<[1], [0], [0], [1], [0, 0, 1, 1], [], []>} : vector<8x4xbf16>, vector<4x288xbf16>, vector<8x288xf32> -> vector<8x288xf32>
    %28 = arith.addf %21, %27 : vector<8x288xf32>
    %c0_i32_30 = arith.constant 0 : i32
    %c0_i32_31 = arith.constant 0 : i32
    %c0_i32_32 = arith.constant 0 : i32
    %29 = tpu.memref_slice %arg1[%c0_i32_30, %c0_i32_31, %c0_i32_32] : memref<1x4x342xbf16, #tpu.memory_space<vmem>> -> memref<1x4x342xbf16, #tpu.memory_space<vmem>>
    %30 = tpu.memref_squeeze %29 : memref<1x4x342xbf16, #tpu.memory_space<vmem>> -> memref<4x342xbf16, #tpu.memory_space<vmem>>
    %c0_33 = arith.constant 0 : index
    %c19 = arith.constant 19 : index
    %31 = vector.load %30[%c0_33, %c19] : memref<4x342xbf16, #tpu.memory_space<vmem>>, vector<4x288xbf16>
    %c4 = arith.constant 4 : index
    %c0_34 = arith.constant 0 : index
    %c0_35 = arith.constant 0 : index
    %32 = vector.load %arg2[%c4, %c0_34, %c0_35] : memref<9x8x4xbf16, #tpu.memory_space<vmem>>, vector<1x8x4xbf16>
    %33 = vector.shape_cast %32 : vector<1x8x4xbf16> to vector<8x4xbf16>
    %cst_36 = arith.constant dense<0.000000e+00> : vector<8x288xf32>
    %34 = tpu.matmul %33, %31, %cst_36 {dimension_numbers = #tpu.dot_dimension_numbers<[1], [0], [0], [1], [0, 0, 1, 1], [], []>} : vector<8x4xbf16>, vector<4x288xbf16>, vector<8x288xf32> -> vector<8x288xf32>
    %35 = arith.addf %28, %34 : vector<8x288xf32>
    %c0_i32_37 = arith.constant 0 : i32
    %c0_i32_38 = arith.constant 0 : i32
    %c0_i32_39 = arith.constant 0 : i32
    %36 = tpu.memref_slice %arg1[%c0_i32_37, %c0_i32_38, %c0_i32_39] : memref<1x4x342xbf16, #tpu.memory_space<vmem>> -> memref<1x4x342xbf16, #tpu.memory_space<vmem>>
    %37 = tpu.memref_squeeze %36 : memref<1x4x342xbf16, #tpu.memory_space<vmem>> -> memref<4x342xbf16, #tpu.memory_space<vmem>>
    %c0_40 = arith.constant 0 : index
    %c20 = arith.constant 20 : index
    %38 = vector.load %37[%c0_40, %c20] : memref<4x342xbf16, #tpu.memory_space<vmem>>, vector<4x288xbf16>
    %c5 = arith.constant 5 : index
    %c0_41 = arith.constant 0 : index
    %c0_42 = arith.constant 0 : index
    %39 = vector.load %arg2[%c5, %c0_41, %c0_42] : memref<9x8x4xbf16, #tpu.memory_space<vmem>>, vector<1x8x4xbf16>
    %40 = vector.shape_cast %39 : vector<1x8x4xbf16> to vector<8x4xbf16>
    %cst_43 = arith.constant dense<0.000000e+00> : vector<8x288xf32>
    %41 = tpu.matmul %40, %38, %cst_43 {dimension_numbers = #tpu.dot_dimension_numbers<[1], [0], [0], [1], [0, 0, 1, 1], [], []>} : vector<8x4xbf16>, vector<4x288xbf16>, vector<8x288xf32> -> vector<8x288xf32>
    %42 = arith.addf %35, %41 : vector<8x288xf32>
    %c0_i32_44 = arith.constant 0 : i32
    %c0_i32_45 = arith.constant 0 : i32
    %c0_i32_46 = arith.constant 0 : i32
    %43 = tpu.memref_slice %arg1[%c0_i32_44, %c0_i32_45, %c0_i32_46] : memref<1x4x342xbf16, #tpu.memory_space<vmem>> -> memref<1x4x342xbf16, #tpu.memory_space<vmem>>
    %44 = tpu.memref_squeeze %43 : memref<1x4x342xbf16, #tpu.memory_space<vmem>> -> memref<4x342xbf16, #tpu.memory_space<vmem>>
    %c0_47 = arith.constant 0 : index
    %c36 = arith.constant 36 : index
    %45 = vector.load %44[%c0_47, %c36] : memref<4x342xbf16, #tpu.memory_space<vmem>>, vector<4x288xbf16>
    %c6 = arith.constant 6 : index
    %c0_48 = arith.constant 0 : index
    %c0_49 = arith.constant 0 : index
    %46 = vector.load %arg2[%c6, %c0_48, %c0_49] : memref<9x8x4xbf16, #tpu.memory_space<vmem>>, vector<1x8x4xbf16>
    %47 = vector.shape_cast %46 : vector<1x8x4xbf16> to vector<8x4xbf16>
    %cst_50 = arith.constant dense<0.000000e+00> : vector<8x288xf32>
    %48 = tpu.matmul %47, %45, %cst_50 {dimension_numbers = #tpu.dot_dimension_numbers<[1], [0], [0], [1], [0, 0, 1, 1], [], []>} : vector<8x4xbf16>, vector<4x288xbf16>, vector<8x288xf32> -> vector<8x288xf32>
    %49 = arith.addf %42, %48 : vector<8x288xf32>
    %c0_i32_51 = arith.constant 0 : i32
    %c0_i32_52 = arith.constant 0 : i32
    %c0_i32_53 = arith.constant 0 : i32
    %50 = tpu.memref_slice %arg1[%c0_i32_51, %c0_i32_52, %c0_i32_53] : memref<1x4x342xbf16, #tpu.memory_space<vmem>> -> memref<1x4x342xbf16, #tpu.memory_space<vmem>>
    %51 = tpu.memref_squeeze %50 : memref<1x4x342xbf16, #tpu.memory_space<vmem>> -> memref<4x342xbf16, #tpu.memory_space<vmem>>
    %c0_54 = arith.constant 0 : index
    %c37 = arith.constant 37 : index
    %52 = vector.load %51[%c0_54, %c37] : memref<4x342xbf16, #tpu.memory_space<vmem>>, vector<4x288xbf16>
    %c7 = arith.constant 7 : index
    %c0_55 = arith.constant 0 : index
    %c0_56 = arith.constant 0 : index
    %53 = vector.load %arg2[%c7, %c0_55, %c0_56] : memref<9x8x4xbf16, #tpu.memory_space<vmem>>, vector<1x8x4xbf16>
    %54 = vector.shape_cast %53 : vector<1x8x4xbf16> to vector<8x4xbf16>
    %cst_57 = arith.constant dense<0.000000e+00> : vector<8x288xf32>
    %55 = tpu.matmul %54, %52, %cst_57 {dimension_numbers = #tpu.dot_dimension_numbers<[1], [0], [0], [1], [0, 0, 1, 1], [], []>} : vector<8x4xbf16>, vector<4x288xbf16>, vector<8x288xf32> -> vector<8x288xf32>
    %56 = arith.addf %49, %55 : vector<8x288xf32>
    %c0_i32_58 = arith.constant 0 : i32
    %c0_i32_59 = arith.constant 0 : i32
    %c0_i32_60 = arith.constant 0 : i32
    %57 = tpu.memref_slice %arg1[%c0_i32_58, %c0_i32_59, %c0_i32_60] : memref<1x4x342xbf16, #tpu.memory_space<vmem>> -> memref<1x4x342xbf16, #tpu.memory_space<vmem>>
    %58 = tpu.memref_squeeze %57 : memref<1x4x342xbf16, #tpu.memory_space<vmem>> -> memref<4x342xbf16, #tpu.memory_space<vmem>>
    %c0_61 = arith.constant 0 : index
    %c38 = arith.constant 38 : index
    %59 = vector.load %58[%c0_61, %c38] : memref<4x342xbf16, #tpu.memory_space<vmem>>, vector<4x288xbf16>
    %c8 = arith.constant 8 : index
    %c0_62 = arith.constant 0 : index
    %c0_63 = arith.constant 0 : index
    %60 = vector.load %arg2[%c8, %c0_62, %c0_63] : memref<9x8x4xbf16, #tpu.memory_space<vmem>>, vector<1x8x4xbf16>
    %61 = vector.shape_cast %60 : vector<1x8x4xbf16> to vector<8x4xbf16>
    %cst_64 = arith.constant dense<0.000000e+00> : vector<8x288xf32>
    %62 = tpu.matmul %61, %59, %cst_64 {dimension_numbers = #tpu.dot_dimension_numbers<[1], [0], [0], [1], [0, 0, 1, 1], [], []>} : vector<8x4xbf16>, vector<4x288xbf16>, vector<8x288xf32> -> vector<8x288xf32>
    %63 = arith.addf %56, %62 : vector<8x288xf32>
    %c0_65 = arith.constant 0 : index
    %c0_66 = arith.constant 0 : index
    %64 = vector.load %arg3[%c0_65, %c0_66] : memref<8x1xf32, #tpu.memory_space<vmem>>, vector<8x1xf32>
    %65 = vector.broadcast %64 : vector<8x1xf32> to vector<8x288xf32>
    %66 = arith.addf %63, %65 : vector<8x288xf32>
    %cst_67 = arith.constant 0.000000e+00 : f32
    %67 = vector.broadcast %cst_67 : f32 to vector<8x288xf32>
    %68 = arith.cmpf oge, %66, %67 : vector<8x288xf32>
    %cst_68 = arith.constant 1.000000e-01 : f32
    %69 = vector.broadcast %cst_68 : f32 to vector<8x288xf32>
    %70 = arith.mulf %69, %66 : vector<8x288xf32>
    %71 = arith.select %68, %66, %70 : vector<8x288xi1>, vector<8x288xf32>
    %c0_69 = arith.constant 0 : index
    %c0_70 = arith.constant 0 : index
    %72 = vector.load %arg6[%c0_69, %c0_70] : memref<1x288xf32, #tpu.memory_space<vmem>>, vector<1x288xf32>
    %73 = vector.broadcast %72 : vector<1x288xf32> to vector<8x288xf32>
    %74 = arith.mulf %71, %73 : vector<8x288xf32>
    %cst_71 = arith.constant 0.000000e+00 : bf16
    %75 = vector.broadcast %cst_71 : bf16 to vector<8x19xbf16>
    %c0_72 = arith.constant 0 : index
    %c0_73 = arith.constant 0 : index
    %76 = vector.load %arg8[%c0_72, %c0_73] : memref<8x342xbf16, #tpu.memory_space<vmem>>, vector<8x19xbf16>
    tpu.vector_store %arg8[%c0_72, %c0_73], %75 {strides = array<i32>} : memref<8x342xbf16, #tpu.memory_space<vmem>>, vector<8x19xbf16>,
    %77 = arith.truncf %74 : vector<8x288xf32> to vector<8x288xbf16>
    %c0_74 = arith.constant 0 : index
    %c19_75 = arith.constant 19 : index
    %78 = vector.load %arg8[%c0_74, %c19_75] : memref<8x342xbf16, #tpu.memory_space<vmem>>, vector<8x288xbf16>
    tpu.vector_store %arg8[%c0_74, %c19_75], %77 {strides = array<i32>} : memref<8x342xbf16, #tpu.memory_space<vmem>>, vector<8x288xbf16>,
    %cst_76 = arith.constant 0.000000e+00 : bf16
    %79 = vector.broadcast %cst_76 : bf16 to vector<8x35xbf16>
    %c0_77 = arith.constant 0 : index
    %c307 = arith.constant 307 : index
    %80 = vector.load %arg8[%c0_77, %c307] : memref<8x342xbf16, #tpu.memory_space<vmem>>, vector<8x35xbf16>
    tpu.vector_store %arg8[%c0_77, %c307], %79 {strides = array<i32>} : memref<8x342xbf16, #tpu.memory_space<vmem>>, vector<8x35xbf16>,
    %cst_78 = arith.constant 0.000000e+00 : f32
    %81 = vector.broadcast %cst_78 : f32 to vector<8x288xf32>
    %c0_79 = arith.constant 0 : index
    %c0_80 = arith.constant 0 : index
    %82 = vector.load %arg8[%c0_79, %c0_80] : memref<8x342xbf16, #tpu.memory_space<vmem>>, vector<8x288xbf16>
    %c0_81 = arith.constant 0 : index
    %c0_82 = arith.constant 0 : index
    %c0_83 = arith.constant 0 : index
    %83 = vector.load %arg4[%c0_81, %c0_82, %c0_83] : memref<9x8x8xbf16, #tpu.memory_space<vmem>>, vector<1x8x8xbf16>
    %84 = vector.shape_cast %83 : vector<1x8x8xbf16> to vector<8x8xbf16>
    %cst_84 = arith.constant dense<0.000000e+00> : vector<8x288xf32>
    %85 = tpu.matmul %84, %82, %cst_84 {dimension_numbers = #tpu.dot_dimension_numbers<[1], [0], [0], [1], [0, 0, 1, 1], [], []>} : vector<8x8xbf16>, vector<8x288xbf16>, vector<8x288xf32> -> vector<8x288xf32>
    %86 = arith.addf %81, %85 : vector<8x288xf32>
    %c0_85 = arith.constant 0 : index
    %c1_86 = arith.constant 1 : index
    %87 = vector.load %arg8[%c0_85, %c1_86] : memref<8x342xbf16, #tpu.memory_space<vmem>>, vector<8x288xbf16>
    %c1_87 = arith.constant 1 : index
    %c0_88 = arith.constant 0 : index
    %c0_89 = arith.constant 0 : index
    %88 = vector.load %arg4[%c1_87, %c0_88, %c0_89] : memref<9x8x8xbf16, #tpu.memory_space<vmem>>, vector<1x8x8xbf16>
    %89 = vector.shape_cast %88 : vector<1x8x8xbf16> to vector<8x8xbf16>
    %cst_90 = arith.constant dense<0.000000e+00> : vector<8x288xf32>
    %90 = tpu.matmul %89, %87, %cst_90 {dimension_numbers = #tpu.dot_dimension_numbers<[1], [0], [0], [1], [0, 0, 1, 1], [], []>} : vector<8x8xbf16>, vector<8x288xbf16>, vector<8x288xf32> -> vector<8x288xf32>
    %91 = arith.addf %86, %90 : vector<8x288xf32>
    %c0_91 = arith.constant 0 : index
    %c2_92 = arith.constant 2 : index
    %92 = vector.load %arg8[%c0_91, %c2_92] : memref<8x342xbf16, #tpu.memory_space<vmem>>, vector<8x288xbf16>
    %c2_93 = arith.constant 2 : index
    %c0_94 = arith.constant 0 : index
    %c0_95 = arith.constant 0 : index
    %93 = vector.load %arg4[%c2_93, %c0_94, %c0_95] : memref<9x8x8xbf16, #tpu.memory_space<vmem>>, vector<1x8x8xbf16>
    %94 = vector.shape_cast %93 : vector<1x8x8xbf16> to vector<8x8xbf16>
    %cst_96 = arith.constant dense<0.000000e+00> : vector<8x288xf32>
    %95 = tpu.matmul %94, %92, %cst_96 {dimension_numbers = #tpu.dot_dimension_numbers<[1], [0], [0], [1], [0, 0, 1, 1], [], []>} : vector<8x8xbf16>, vector<8x288xbf16>, vector<8x288xf32> -> vector<8x288xf32>
    %96 = arith.addf %91, %95 : vector<8x288xf32>
    %c0_97 = arith.constant 0 : index
    %c18_98 = arith.constant 18 : index
    %97 = vector.load %arg8[%c0_97, %c18_98] : memref<8x342xbf16, #tpu.memory_space<vmem>>, vector<8x288xbf16>
    %c3_99 = arith.constant 3 : index
    %c0_100 = arith.constant 0 : index
    %c0_101 = arith.constant 0 : index
    %98 = vector.load %arg4[%c3_99, %c0_100, %c0_101] : memref<9x8x8xbf16, #tpu.memory_space<vmem>>, vector<1x8x8xbf16>
    %99 = vector.shape_cast %98 : vector<1x8x8xbf16> to vector<8x8xbf16>
    %cst_102 = arith.constant dense<0.000000e+00> : vector<8x288xf32>
    %100 = tpu.matmul %99, %97, %cst_102 {dimension_numbers = #tpu.dot_dimension_numbers<[1], [0], [0], [1], [0, 0, 1, 1], [], []>} : vector<8x8xbf16>, vector<8x288xbf16>, vector<8x288xf32> -> vector<8x288xf32>
    %101 = arith.addf %96, %100 : vector<8x288xf32>
    %c0_103 = arith.constant 0 : index
    %c19_104 = arith.constant 19 : index
    %102 = vector.load %arg8[%c0_103, %c19_104] : memref<8x342xbf16, #tpu.memory_space<vmem>>, vector<8x288xbf16>
    %c4_105 = arith.constant 4 : index
    %c0_106 = arith.constant 0 : index
    %c0_107 = arith.constant 0 : index
    %103 = vector.load %arg4[%c4_105, %c0_106, %c0_107] : memref<9x8x8xbf16, #tpu.memory_space<vmem>>, vector<1x8x8xbf16>
    %104 = vector.shape_cast %103 : vector<1x8x8xbf16> to vector<8x8xbf16>
    %cst_108 = arith.constant dense<0.000000e+00> : vector<8x288xf32>
    %105 = tpu.matmul %104, %102, %cst_108 {dimension_numbers = #tpu.dot_dimension_numbers<[1], [0], [0], [1], [0, 0, 1, 1], [], []>} : vector<8x8xbf16>, vector<8x288xbf16>, vector<8x288xf32> -> vector<8x288xf32>
    %106 = arith.addf %101, %105 : vector<8x288xf32>
    %c0_109 = arith.constant 0 : index
    %c20_110 = arith.constant 20 : index
    %107 = vector.load %arg8[%c0_109, %c20_110] : memref<8x342xbf16, #tpu.memory_space<vmem>>, vector<8x288xbf16>
    %c5_111 = arith.constant 5 : index
    %c0_112 = arith.constant 0 : index
    %c0_113 = arith.constant 0 : index
    %108 = vector.load %arg4[%c5_111, %c0_112, %c0_113] : memref<9x8x8xbf16, #tpu.memory_space<vmem>>, vector<1x8x8xbf16>
    %109 = vector.shape_cast %108 : vector<1x8x8xbf16> to vector<8x8xbf16>
    %cst_114 = arith.constant dense<0.000000e+00> : vector<8x288xf32>
    %110 = tpu.matmul %109, %107, %cst_114 {dimension_numbers = #tpu.dot_dimension_numbers<[1], [0], [0], [1], [0, 0, 1, 1], [], []>} : vector<8x8xbf16>, vector<8x288xbf16>, vector<8x288xf32> -> vector<8x288xf32>
    %111 = arith.addf %106, %110 : vector<8x288xf32>
    %c0_115 = arith.constant 0 : index
    %c36_116 = arith.constant 36 : index
    %112 = vector.load %arg8[%c0_115, %c36_116] : memref<8x342xbf16, #tpu.memory_space<vmem>>, vector<8x288xbf16>
    %c6_117 = arith.constant 6 : index
    %c0_118 = arith.constant 0 : index
    %c0_119 = arith.constant 0 : index
    %113 = vector.load %arg4[%c6_117, %c0_118, %c0_119] : memref<9x8x8xbf16, #tpu.memory_space<vmem>>, vector<1x8x8xbf16>
    %114 = vector.shape_cast %113 : vector<1x8x8xbf16> to vector<8x8xbf16>
    %cst_120 = arith.constant dense<0.000000e+00> : vector<8x288xf32>
    %115 = tpu.matmul %114, %112, %cst_120 {dimension_numbers = #tpu.dot_dimension_numbers<[1], [0], [0], [1], [0, 0, 1, 1], [], []>} : vector<8x8xbf16>, vector<8x288xbf16>, vector<8x288xf32> -> vector<8x288xf32>
    %116 = arith.addf %111, %115 : vector<8x288xf32>
    %c0_121 = arith.constant 0 : index
    %c37_122 = arith.constant 37 : index
    %117 = vector.load %arg8[%c0_121, %c37_122] : memref<8x342xbf16, #tpu.memory_space<vmem>>, vector<8x288xbf16>
    %c7_123 = arith.constant 7 : index
    %c0_124 = arith.constant 0 : index
    %c0_125 = arith.constant 0 : index
    %118 = vector.load %arg4[%c7_123, %c0_124, %c0_125] : memref<9x8x8xbf16, #tpu.memory_space<vmem>>, vector<1x8x8xbf16>
    %119 = vector.shape_cast %118 : vector<1x8x8xbf16> to vector<8x8xbf16>
    %cst_126 = arith.constant dense<0.000000e+00> : vector<8x288xf32>
    %120 = tpu.matmul %119, %117, %cst_126 {dimension_numbers = #tpu.dot_dimension_numbers<[1], [0], [0], [1], [0, 0, 1, 1], [], []>} : vector<8x8xbf16>, vector<8x288xbf16>, vector<8x288xf32> -> vector<8x288xf32>
    %121 = arith.addf %116, %120 : vector<8x288xf32>
    %c0_127 = arith.constant 0 : index
    %c38_128 = arith.constant 38 : index
    %122 = vector.load %arg8[%c0_127, %c38_128] : memref<8x342xbf16, #tpu.memory_space<vmem>>, vector<8x288xbf16>
    %c8_129 = arith.constant 8 : index
    %c0_130 = arith.constant 0 : index
    %c0_131 = arith.constant 0 : index
    %123 = vector.load %arg4[%c8_129, %c0_130, %c0_131] : memref<9x8x8xbf16, #tpu.memory_space<vmem>>, vector<1x8x8xbf16>
    %124 = vector.shape_cast %123 : vector<1x8x8xbf16> to vector<8x8xbf16>
    %cst_132 = arith.constant dense<0.000000e+00> : vector<8x288xf32>
    %125 = tpu.matmul %124, %122, %cst_132 {dimension_numbers = #tpu.dot_dimension_numbers<[1], [0], [0], [1], [0, 0, 1, 1], [], []>} : vector<8x8xbf16>, vector<8x288xbf16>, vector<8x288xf32> -> vector<8x288xf32>
    %126 = arith.addf %121, %125 : vector<8x288xf32>
    %c0_133 = arith.constant 0 : index
    %c0_134 = arith.constant 0 : index
    %127 = vector.load %arg5[%c0_133, %c0_134] : memref<8x1xf32, #tpu.memory_space<vmem>>, vector<8x1xf32>
    %128 = vector.broadcast %127 : vector<8x1xf32> to vector<8x288xf32>
    %129 = arith.addf %126, %128 : vector<8x288xf32>
    %cst_135 = arith.constant 0.000000e+00 : f32
    %130 = vector.broadcast %cst_135 : f32 to vector<8x288xf32>
    %131 = arith.cmpf oge, %129, %130 : vector<8x288xf32>
    %cst_136 = arith.constant 1.000000e-01 : f32
    %132 = vector.broadcast %cst_136 : f32 to vector<8x288xf32>
    %133 = arith.mulf %132, %129 : vector<8x288xf32>
    %134 = arith.select %131, %129, %133 : vector<8x288xi1>, vector<8x288xf32>
    %c0_137 = arith.constant 0 : index
    %c0_138 = arith.constant 0 : index
    %c0_139 = arith.constant 0 : index
    %135 = vector.load %arg7[%c0_137, %c0_138, %c0_139] : memref<1x8x288xf32, #tpu.memory_space<vmem>>, vector<1x8x288xf32>
    %136 = vector.shape_cast %135 : vector<1x8x288xf32> to vector<8x288xf32>
    %137 = vector.shape_cast %134 : vector<8x288xf32> to vector<1x8x288xf32>
    tpu.vector_store %arg7[%c0_137, %c0_138, %c0_139], %137 {strides = array<i32>} : memref<1x8x288xf32, #tpu.memory_space<vmem>>, vector<1x8x288xf32>,
    return
  }
  func.func @transform_0(%arg0: i32) -> (i32, i32, i32) {
    %c0_i32 = arith.constant 0 : i32
    %c0_i32_0 = arith.constant 0 : i32
    %c0_i32_1 = arith.constant 0 : i32
    return %arg0, %c0_i32, %c0_i32_0 : i32, i32, i32
  }
  func.func @transform_1(%arg0: i32) -> (i32, i32, i32) {
    %c0_i32 = arith.constant 0 : i32
    %c0_i32_0 = arith.constant 0 : i32
    %c0_i32_1 = arith.constant 0 : i32
    %c0_i32_2 = arith.constant 0 : i32
    return %c0_i32, %c0_i32_0, %c0_i32_1 : i32, i32, i32
  }
  func.func @transform_2(%arg0: i32) -> (i32, i32) {
    %c0_i32 = arith.constant 0 : i32
    %c0_i32_0 = arith.constant 0 : i32
    %c0_i32_1 = arith.constant 0 : i32
    return %c0_i32, %c0_i32_0 : i32, i32
  }
  func.func @transform_3(%arg0: i32) -> (i32, i32, i32) {
    %c0_i32 = arith.constant 0 : i32
    %c0_i32_0 = arith.constant 0 : i32
    %c0_i32_1 = arith.constant 0 : i32
    %c0_i32_2 = arith.constant 0 : i32
    return %c0_i32, %c0_i32_0, %c0_i32_1 : i32, i32, i32
  }
  func.func @transform_4(%arg0: i32) -> (i32, i32) {
    %c0_i32 = arith.constant 0 : i32
    %c0_i32_0 = arith.constant 0 : i32
    %c0_i32_1 = arith.constant 0 : i32
    return %c0_i32, %c0_i32_0 : i32, i32
  }
  func.func @transform_5(%arg0: i32) -> (i32, i32) {
    %c0_i32 = arith.constant 0 : i32
    %c0_i32_0 = arith.constant 0 : i32
    %c0_i32_1 = arith.constant 0 : i32
    return %c0_i32, %c0_i32_0 : i32, i32
  }
  func.func @transform_6(%arg0: i32) -> (i32, i32, i32) {
    %c0_i32 = arith.constant 0 : i32
    %c0_i32_0 = arith.constant 0 : i32
    %c0_i32_1 = arith.constant 0 : i32
    return %arg0, %c0_i32, %c0_i32_0 : i32, i32, i32
  }
}

</mosaic_0001>

<bundles_post_ra>
// kernel: tpu_custom_call.1
= control target key start
LH: loop header
LB: loop body
LE: loop exit
PB: predicated region body
PF: predicated region fallthrough
CT: control target
= control target key end

     0   :  { %11 = vsyncpa [#allocation4], 0  ;;  %s3329_s0 = inlined_call_operand.vmem [shape: bf16[2,4,342], index: 0, kind: input, shape index: {}]   ;;  %s3330_s1 = inlined_call_operand.vmem [shape: bf16[9,8,4], index: 1, kind: input, shape index: {}]   ;;  %s3331_s2 = inlined_call_operand.vmem [shape: f32[8,1], index: 2, kind: input, shape index: {}]   ;;  %s3332_s3 = inlined_call_operand.vmem [shape: bf16[9,8,8], index: 3, kind: input, shape index: {}]   ;;  %s3333_s4 = inlined_call_operand.vmem [shape: f32[8,1], index: 4, kind: input, shape index: {}]   ;;  %s3334_s5 = inlined_call_operand.vmem [shape: f32[1,288], index: 5, kind: input, shape index: {}]   ;;  %s3335_s6 = inlined_call_operand.hbm [shape: f32[2,8,288], index: 6, kind: output, shape index: {}]  }
   0x1   :  { %13 = vsyncpa [#allocation4 + $0x1], 0  ;;  %s2869_s21 = smov 0   ;;  %s2871_s22 = smov 0  }
   0x2   :  { %s2873_s23 = smov 0   ;;  %s2875_s24 = smov 0  }
   0x3 LB: > { %s2890_s25 = sadd.s32 4294967295, %s2818_s24   ;;  %s2460_s26 = sadd.s32 4294967294, %s2818_s24   ;;  %s2818_s24 = sphi %s2875_s24, %s3344_s24   ;;  %s2814_s23 = sphi %s2873_s23, %s3343_s23   ;;  %s2810_s22 = sphi %s2871_s22, %s3342_s22   ;;  %s2806_s21 = sphi %s2869_s21, %s3341_s21  }
   0x4   : > { %s2894_s27 = sadd.s32 1, %s2818_s24   ;;  %s157_s28 = sadd.s32 1, %s2814_s23 }
   0x5   : > { %s154_s29 = ssub.s32 %s2818_s24, %s2894_s27  ;;  %p167_p0 = scmp.ne.s32.totalorder %s2814_s23, %s2810_s22 }
   0x6   : > { %p155_p1 = scmp.eq.s32.totalorder %s154_s29, 0  ;;  %p168_p2 = scmp.eq.s32.totalorder %s2890_s25, 1 }
   0x7   : > { %p173_p3 = scmp.ne.s32.totalorder %s2810_s22, %s2806_s21  ;;  %p174_p4 = scmp.eq.s32.totalorder %s2460_s26, 1 }
   0x8   : > { %s2905_s30 = scalar_select %p155_p1, %s2814_s23, %s157_s28  }
   0x9   : > { %p2907_p5 = por %p168_p2, %p167_p0  ;;  %p2911_p6 = por %p174_p4, %p173_p3 }
   0xa   : > { %p2463_p7 = scmp.ge.s32.totalorder %s2818_s24, 1  ;;  %p215_p8 = scmp.lt.s32.totalorder %s2818_s24, 3 }
   0xc   : > { %p216_p9 = pnand %p2463_p7, %p215_p8 }
   0xd   : > { %p245_p10 = scmp.lt.s32.totalorder (!%p216_p9), %s2890_s25, 1  ;;  %v260_v0 = vlaneseq (!%p216_p9)  ;;  %v2820_v1 = vmov (!%p216_p9), 1983009808   ;;  %v2821_v3 = vmov (!%p216_p9), 0.0   ;;  %vm2822_vm0 = vmmov (!%p216_p9), 0   ;;  %s2824_s14 = smov (!%p216_p9), 127  }
   0xe   : > { %219 = sbr.rel (%p216_p9) target bundleno = 991 (0x3df), region = 44  ;;  %v258_v2 = vunpack.c.l.s4 (!%p216_p9), %v2820_v1  ;;  %2581 = vmatprep.subr.bf16.mxu1 (!%p216_p9), %v2821_v3  ;;  %2583 = vmatprep.mubr.msk.bf16.mxu1 (!%p216_p9), %vm2822_vm0, %v2821_v3  ;;  %v2823_v6 = vmov (!%p216_p9), 0   ;;  %s2825_s15 = smov (!%p216_p9), 126   ;;  %v1344_v48 = vld [vmem:[%s3331_s2] sm:$0xff] (!%p216_p9)  ;;  %vm285_vm1 = vcmask (!%p216_p9), 1041408   ;;  %vm278_vm2 = vcmask (!%p216_p9), 1039360  }
   0xf   : > { %v2920_v4 = vshrl.u32 (!%p216_p9), %v260_v0, 7  ;;  %327 = vmatprep.mubr.bf16.mxu0 (!%p216_p9), %v2823_v6  ;;  %2744 = vset.pattern.permute.xlu0 (!%p216_p9), %v2823_v6  ;;  %s2826_s16 = smov (!%p216_p9), 110   ;;  %s2827_s17 = smov (!%p216_p9), 109   ;;  %v2465_v53 = vld [vmem:[%s3330_s1 + $0x4] sm:$0xf] (!%p216_p9)  ;;  %vm281_vm3 = vcmask (!%p216_p9), 31744  }
  0x10   : > { %v259_v5 = vunpack.c.0.s8 (!%p216_p9), %v258_v2  ;;  %s2828_s18 = smov (!%p216_p9), 108   ;;  %s2829_s19 = smov (!%p216_p9), 92   ;;  %vm495_vm4 = vcmask (!%p216_p9), 1031168   ;;  %v252_v63 = vld [vmem:[%s3330_s1] sm:$0xf] (!%p216_p9)  ;;  %vm620_vm5 = vcmask (!%p216_p9), 900096  }
  0x11   : > { %s2830_s20 = smov (!%p216_p9), 91   ;;  %s2831_s26 = smov (!%p216_p9), 90   ;;  %vm745_vm6 = vcmask (!%p216_p9), 891904   ;;  %vm870_vm7 = vcmask (!%p216_p9), 883712   ;;  %vm995_vm8 = vcmask (!%p216_p9), 752640   ;;  %vm1120_vm9 = vcmask (!%p216_p9), 744448  }
  0x12   : > { %v2927_v7 = vsub.s32 (!%p216_p9), %v259_v5, %v2920_v4  ;;  %vm3336_vm10 = vcmask (!%p216_p9), 736256   ;;  %vm1382_vm11 = vcmask (!%p216_p9), 150528   ;;  %s2832_s29 = smov (!%p216_p9), 19   ;;  %vm1405_vm15 = vcmask (!%p216_p9), 1043608  }
  0x13   : > { %1383 = vst.msk [vmem:[#allocation2] sm:$0xf] (!%p216_p9), %vm1382_vm11, %v2823_v6 }
  0x15   : > { %s246_s9 = scalar_select %p245_p10, %s2890_s25, 1 }
  0x17   : > { %s2690_s10 = smul.u32 6, %s246_s9 }
  0x19   : > { %s2932_s13 = scalar_lea.vmem %s3329_s0, %s2690_s10 }
  0x1a   : > { %v251_v8 = vld [vmem:[%s2932_s13] sm:$0x3f] }
  0x1b   : > { %v2936_v9 = vrot.slane %v251_v8, %v2927_v7  ;;  %v256_v10 = vcombine.high %v251_v8, %v251_v8  ;;  %v469_v11 = vld [vmem:[%s2932_s13] sm:$0x3f] }
  0x1c   : > { %v480_v14 = vrot.slane %v469_v11, %v2927_v7  ;;  %v473_v15 = vcombine.high %v469_v11, %v469_v11  ;;  %v594_v17 = vld [vmem:[%s2932_s13] sm:$0x3f]  ;;  %v2472_v11 = vld [vmem:[%s3330_s1 + $0x8] sm:$0xf] }
  0x1d   : > { %272 = vrot.lane.b32.xlu0 %v2936_v9, %s2824_s14  ;;  %v2942_v12 = vrot.slane %v256_v10, %v2927_v7  ;;  %v2946_v13 = vcombine.high %v2936_v9, %v2936_v9  ;;  %v605_v19 = vrot.slane %v594_v17, %v2927_v7  ;;  %v598_v20 = vcombine.high %v594_v17, %v594_v17  ;;  %v719_v22 = vld [vmem:[%s2932_s13] sm:$0x3f] }
  0x1e   : > { %v488_v16 = vcombine.high %v480_v14, %v480_v14  ;;  %v487_v18 = vrot.slane %v473_v15, %v2927_v7  ;;  %v730_v24 = vrot.slane %v719_v22, %v2927_v7  ;;  %v723_v25 = vcombine.high %v719_v22, %v719_v22  ;;  %v844_v27 = vld [vmem:[%s2932_s13] sm:$0x3f] }
  0x1f   : > { %276 = vrot.lane.b32.xlu1 %v2942_v12, %s2824_s14  ;;  %v613_v21 = vcombine.high %v605_v19, %v605_v19  ;;  %v612_v23 = vrot.slane %v598_v20, %v2927_v7  ;;  %v855_v29 = vrot.slane %v844_v27, %v2927_v7  ;;  %v848_v30 = vcombine.high %v844_v27, %v844_v27  ;;  %v969_v32 = vld [vmem:[%s2932_s13] sm:$0x3f]  ;;  %v2476_v20 = vld [vmem:[%s3330_s1 + $0xc] sm:$0xf] }
  0x20   : > { %v738_v26 = vcombine.high %v730_v24, %v730_v24  ;;  %v737_v28 = vrot.slane %v723_v25, %v2927_v7  ;;  %v980_v34 = vrot.slane %v969_v32, %v2927_v7  ;;  %v973_v35 = vcombine.high %v969_v32, %v969_v32  ;;  %v1094_v37 = vld [vmem:[%s2932_s13] sm:$0x3f] }
  0x21   : > { %274 = vrot.lane.b32.xlu0 %v2946_v13, %s2824_s14  ;;  %v863_v31 = vcombine.high %v855_v29, %v855_v29  ;;  %v862_v33 = vrot.slane %v848_v30, %v2927_v7  ;;  %v1105_v39 = vrot.slane %v1094_v37, %v2927_v7  ;;  %v1098_v40 = vcombine.high %v1094_v37, %v1094_v37  ;;  %v1219_v42 = vld [vmem:[%s2932_s13] sm:$0x3f] }
  0x22   : > { %v988_v36 = vcombine.high %v980_v34, %v980_v34  ;;  %v987_v38 = vrot.slane %v973_v35, %v2927_v7  ;;  %v1230_v44 = vrot.slane %v1219_v42, %v2927_v7  ;;  %v1223_v45 = vcombine.high %v1219_v42, %v1219_v42 }
  0x23   : > { %489 = vrot.lane.b32.xlu1 %v480_v14, %s2825_s15  ;;  %v1113_v41 = vcombine.high %v1105_v39, %v1105_v39  ;;  %v1112_v43 = vrot.slane %v1098_v40, %v2927_v7  ;;  %v386_v56 = vsel %vm285_vm1, %v2942_v12, 0  ;;  %v380_v59 = vsel %vm285_vm1, %v2936_v9, 0 }
  0x24   : > { %v1238_v46 = vcombine.high %v1230_v44, %v1230_v44  ;;  %v1237_v47 = vrot.slane %v1223_v45, %v2927_v7 }
  0x25   : > { %491 = vrot.lane.b32.xlu0 %v488_v16, %s2825_s15 }
  0x27   : > { %493 = vrot.lane.b32.xlu1 %v487_v18, %s2825_s15 }
  0x29   : > { %614 = vrot.lane.b32.xlu0 %v605_v19, %s2826_s16 }
  0x2b   : > { %616 = vrot.lane.b32.xlu1 %v613_v21, %s2826_s16 }
  0x2d   : > { %618 = vrot.lane.b32.xlu0 %v612_v23, %s2826_s16 }
  0x2f   : > { %739 = vrot.lane.b32.xlu1 %v730_v24, %s2827_s17 }
  0x31   : > { %741 = vrot.lane.b32.xlu0 %v738_v26, %s2827_s17 }
  0x33   : > { %743 = vrot.lane.b32.xlu1 %v737_v28, %s2827_s17  ;;  %v2480_v28 = vld [vmem:[%s3330_s1 + $0x10] sm:$0xf] }
  0x35   : > { %864 = vrot.lane.b32.xlu0 %v855_v29, %s2828_s18 }
  0x37   : > { %866 = vrot.lane.b32.xlu1 %v863_v31, %s2828_s18 }
  0x39   : > { %868 = vrot.lane.b32.xlu0 %v862_v33, %s2828_s18 }
  0x3b   : > { %989 = vrot.lane.b32.xlu1 %v980_v34, %s2829_s19 }
  0x3d   : > { %991 = vrot.lane.b32.xlu0 %v988_v36, %s2829_s19  ;;  %v2484_v36 = vld [vmem:[%s3330_s1 + $0x14] sm:$0xf] }
  0x3f   : > { %993 = vrot.lane.b32.xlu1 %v987_v38, %s2829_s19 }
  0x41   : > { %1114 = vrot.lane.b32.xlu0 %v1105_v39, %s2830_s20 }
  0x43   : > { %1116 = vrot.lane.b32.xlu1 %v1113_v41, %s2830_s20 }
  0x45   : > { %1118 = vrot.lane.b32.xlu0 %v1112_v43, %s2830_s20  ;;  %v2488_v43 = vld [vmem:[%s3330_s1 + $0x18] sm:$0xf] }
  0x47   : > { %1239 = vrot.lane.b32.xlu1 %v1230_v44, %s2831_s26 }
  0x49   : > { %1241 = vrot.lane.b32.xlu0 %v1238_v46, %s2831_s26 }
  0x4b   : > { %1243 = vrot.lane.b32.xlu1 %v1237_v47, %s2831_s26 }
  0x4d   : > { %1347 = vperm.xlu0 %2744, %v1344_v48  }
  0x8f   : > { %v273_v49 = vpop.permute.xlu0 %272 }
  0x91   : > { %v277_v50 = vpop.permute.xlu1 %276 }
  0x92   : > { %v293_v51 = vsel %vm285_vm1, %v277_v50, 0 }
  0x93   : > { %v275_v52 = vpop.permute.xlu0 %274  ;;  %2582 = vmatpush3.bf16.msra.mxu1 %v293_v51 }
  0x94   : > { %v280_v54 = vsel %vm278_vm2, %v275_v52, %v277_v50  ;;  %v279_v55 = vsel %vm278_vm2, %v273_v49, %v275_v52  ;;  %2587 = vmatprep.subr.bf16.mxu1 %v2821_v3  ;;  %v2492_v50 = vld [vmem:[%s3330_s1 + $0x1c] sm:$0xf] }
  0x95   : > { %2466 = vmatprep.subr.msk.bf16.mxu0 %vm285_vm1, %v280_v54  ;;  %v287_v57 = vsel %vm285_vm1, %v279_v55, 0  ;;  %v490_v58 = vpop.permute.xlu1 %489  ;;  %v2496_v54 = vld [vmem:[%s3330_s1 + $0x20] sm:$0xf] }
  0x96   : > { %296 = vmatpush1.bf16.msra.mxu0 %v287_v57  ;;  %2584 = vmatmul.mubr.msk.bf16.vlgmr.msra.gmra.mrb[0].mxu1 %vm281_vm3, %v2465_v53 }
  0x97   : > { %2588 = vmatpush3.bf16.msra.mxu1 %v386_v56  ;;  %2469 = vmatprep.subr.msk.bf16.mxu0 %vm285_vm1, %v2946_v13  ;;  %v492_v60 = vpop.permute.xlu0 %491 }
  0x98   : > { %2589 = vmatprep.mubr.msk.bf16.mxu1 %vm2822_vm0, %v2821_v3  ;;  %2593 = vmatprep.subr.bf16.mxu1 %v2821_v3  ;;  %v496_v1 = vsel %vm495_vm4, %v490_v58, %v492_v60 }
  0x99   : > { %2467 = vmatmul.mubr.msk.bf16.vlgmr.msra.gmra.mrb[0].mxu0 %vm281_vm3, %v2465_v53  ;;  %v494_v61 = vpop.permute.xlu1 %493  ;;  %v502_v7 = vsel %vm285_vm1, %v496_v1, 0 }
  0x9a   : > { %389 = vmatpush1.bf16.msra.mxu0 %v380_v59  ;;  %v497_v62 = vsel %vm495_vm4, %v492_v60, %v494_v61  ;;  %420 = vmatprep.mubr.bf16.mxu0 %v2823_v6  ;;  %v508_v2 = vsel %vm285_vm1, %v494_v61, 0 }
  0x9b   : > { %2473 = vmatprep.subr.msk.bf16.mxu0 %vm285_vm1, %v497_v62  ;;  %v615_v0 = vpop.permute.xlu0 %614 }
  0x9d   : > { %v617_v5 = vpop.permute.xlu1 %616 }
  0x9e   : > { %2590 = vmatmul.mubr.msk.bf16.vlgmr.msra.gmra.mrb[4].mxu1 %vm281_vm3, %v252_v63  ;;  %v621_v14 = vsel %vm620_vm5, %v615_v0, %v617_v5 }
  0x9f   : > { %2594 = vmatpush3.bf16.msra.mxu1 %v508_v2  ;;  %2595 = vmatprep.mubr.msk.bf16.mxu1 %vm2822_vm0, %v2821_v3  ;;  %v619_v8 = vpop.permute.xlu0 %618  ;;  %v627_v16 = vsel %vm285_vm1, %v621_v14, 0 }
  0xa0   : > { %v622_v9 = vsel %vm620_vm5, %v617_v5, %v619_v8  ;;  %2599 = vmatprep.subr.bf16.mxu1 %v2821_v3  ;;  %v633_v13 = vsel %vm285_vm1, %v619_v8, 0 }
  0xa1   : > { %2470 = vmatmul.mubr.msk.bf16.vlgmr.msra.gmra.mrb[4].mxu0 %vm281_vm3, %v252_v63  ;;  %v740_v10 = vpop.permute.xlu1 %739 }
  0xa2   : > { %511 = vmatpush1.bf16.msra.mxu0 %v502_v7  ;;  %542 = vmatprep.mubr.bf16.mxu0 %v2823_v6 }
  0xa3   : > { %2477 = vmatprep.subr.msk.bf16.mxu0 %vm285_vm1, %v622_v9  ;;  %v742_v12 = vpop.permute.xlu0 %741 }
  0xa4   : > { %v746_v21 = vsel %vm745_vm6, %v740_v10, %v742_v12 }
  0xa5   : > { %v744_v15 = vpop.permute.xlu1 %743  ;;  %v752_v24 = vsel %vm285_vm1, %v746_v21, 0 }
  0xa6   : > { %2596 = vmatmul.mubr.msk.bf16.vlgmr.msra.gmra.mrb[8].mxu1 %vm281_vm3, %v2472_v11  ;;  %v747_v18 = vsel %vm745_vm6, %v742_v12, %v744_v15  ;;  %v758_v22 = vsel %vm285_vm1, %v744_v15, 0 }
  0xa7   : > { %2600 = vmatpush3.bf16.msra.mxu1 %v633_v13  ;;  %2601 = vmatprep.mubr.msk.bf16.mxu1 %vm2822_vm0, %v2821_v3  ;;  %v865_v17 = vpop.permute.xlu0 %864 }
  0xa8   : > { %2605 = vmatprep.subr.bf16.mxu1 %v2821_v3 }
  0xa9   : > { %2474 = vmatmul.mubr.msk.bf16.vlgmr.msra.gmra.mrb[8].mxu0 %vm281_vm3, %v2472_v11  ;;  %v867_v19 = vpop.permute.xlu1 %866 }
  0xaa   : > { %636 = vmatpush1.bf16.msra.mxu0 %v627_v16  ;;  %667 = vmatprep.mubr.bf16.mxu0 %v2823_v6  ;;  %v871_v30 = vsel %vm870_vm7, %v865_v17, %v867_v19 }
  0xab   : > { %2481 = vmatprep.subr.msk.bf16.mxu0 %vm285_vm1, %v747_v18  ;;  %v869_v23 = vpop.permute.xlu0 %868  ;;  %v877_v32 = vsel %vm285_vm1, %v871_v30, 0 }
  0xac   : > { %v872_v26 = vsel %vm870_vm7, %v867_v19, %v869_v23  ;;  %v883_v29 = vsel %vm285_vm1, %v869_v23, 0 }
  0xad   : > { %v990_v25 = vpop.permute.xlu1 %989 }
  0xae   : > { %2602 = vmatmul.mubr.msk.bf16.vlgmr.msra.gmra.mrb[12].mxu1 %vm281_vm3, %v2476_v20 }
  0xaf   : > { %2606 = vmatpush3.bf16.msra.mxu1 %v758_v22  ;;  %2607 = vmatprep.mubr.msk.bf16.mxu1 %vm2822_vm0, %v2821_v3  ;;  %v992_v27 = vpop.permute.xlu0 %991 }
  0xb0   : > { %2611 = vmatprep.subr.bf16.mxu1 %v2821_v3  ;;  %v996_v37 = vsel %vm995_vm8, %v990_v25, %v992_v27 }
  0xb1   : > { %2478 = vmatmul.mubr.msk.bf16.vlgmr.msra.gmra.mrb[12].mxu0 %vm281_vm3, %v2476_v20  ;;  %v994_v31 = vpop.permute.xlu1 %993  ;;  %v1002_v40 = vsel %vm285_vm1, %v996_v37, 0 }
  0xb2   : > { %761 = vmatpush1.bf16.msra.mxu0 %v752_v24  ;;  %792 = vmatprep.mubr.bf16.mxu0 %v2823_v6  ;;  %v997_v34 = vsel %vm995_vm8, %v992_v27, %v994_v31  ;;  %v1008_v38 = vsel %vm285_vm1, %v994_v31, 0 }
  0xb3   : > { %2485 = vmatprep.subr.msk.bf16.mxu0 %vm285_vm1, %v872_v26  ;;  %v1115_v33 = vpop.permute.xlu0 %1114 }
  0xb5   : > { %v1117_v35 = vpop.permute.xlu1 %1116 }
  0xb6   : > { %2608 = vmatmul.mubr.msk.bf16.vlgmr.msra.gmra.mrb[16].mxu1 %vm281_vm3, %v2480_v28  ;;  %v1121_v45 = vsel %vm1120_vm9, %v1115_v33, %v1117_v35 }
  0xb7   : > { %2612 = vmatpush3.bf16.msra.mxu1 %v883_v29  ;;  %2613 = vmatprep.mubr.msk.bf16.mxu1 %vm2822_vm0, %v2821_v3  ;;  %v1119_v39 = vpop.permute.xlu0 %1118  ;;  %v1127_v48 = vsel %vm285_vm1, %v1121_v45, 0 }
  0xb8   : > { %2617 = vmatprep.subr.bf16.mxu1 %v2821_v3  ;;  %v1122_v42 = vsel %vm1120_vm9, %v1117_v35, %v1119_v39  ;;  %v1133_v44 = vsel %vm285_vm1, %v1119_v39, 0 }
  0xb9   : > { %2482 = vmatmul.mubr.msk.bf16.vlgmr.msra.gmra.mrb[16].mxu0 %vm281_vm3, %v2480_v28  ;;  %v1240_v41 = vpop.permute.xlu1 %1239 }
  0xba   : > { %886 = vmatpush1.bf16.msra.mxu0 %v877_v32  ;;  %917 = vmatprep.mubr.bf16.mxu0 %v2823_v6 }
  0xbb   : > { %2489 = vmatprep.subr.msk.bf16.mxu0 %vm285_vm1, %v997_v34  ;;  %v1242_v46 = vpop.permute.xlu0 %1241 }
  0xbc   : > { %v1246_v51 = vsel %vm3336_vm10, %v1240_v41, %v1242_v46 }
  0xbd   : > { %v1244_v47 = vpop.permute.xlu1 %1243  ;;  %v1252_v53 = vsel %vm285_vm1, %v1246_v51, 0 }
  0xbe   : > { %2614 = vmatmul.mubr.msk.bf16.vlgmr.msra.gmra.mrb[20].mxu1 %vm281_vm3, %v2484_v36  ;;  %v1247_v49 = vsel %vm3336_vm10, %v1242_v46, %v1244_v47  ;;  %v1258_v52 = vsel %vm285_vm1, %v1244_v47, 0  ;;  %vm1409_vm10 = vcmask 412672  }
  0xbf   : > { %2618 = vmatpush3.bf16.msra.mxu1 %v1008_v38  ;;  %2619 = vmatprep.mubr.msk.bf16.mxu1 %vm2822_vm0, %v2821_v3 }
  0xc0   : > { %2623 = vmatprep.subr.bf16.mxu1 %v2821_v3 }
  0xc1   : > { %2486 = vmatmul.mubr.msk.bf16.vlgmr.msra.gmra.mrb[20].mxu0 %vm281_vm3, %v2484_v36 }
  0xc2   : > { %1011 = vmatpush1.bf16.msra.mxu0 %v1002_v40  ;;  %1042 = vmatprep.mubr.bf16.mxu0 %v2823_v6 }
  0xc3   : > { %2493 = vmatprep.subr.msk.bf16.mxu0 %vm285_vm1, %v1122_v42 }
  0xc6   : > { %2620 = vmatmul.mubr.msk.bf16.vlgmr.msra.gmra.mrb[24].mxu1 %vm281_vm3, %v2488_v43 }
  0xc7   : > { %2624 = vmatpush3.bf16.msra.mxu1 %v1133_v44  ;;  %2625 = vmatprep.mubr.msk.bf16.mxu1 %vm2822_vm0, %v2821_v3 }
  0xc8   : > { %2629 = vmatprep.subr.bf16.mxu1 %v2821_v3 }
  0xc9   : > { %2490 = vmatmul.mubr.msk.bf16.vlgmr.msra.gmra.mrb[24].mxu0 %vm281_vm3, %v2488_v43 }
  0xca   : > { %1136 = vmatpush1.bf16.msra.mxu0 %v1127_v48  ;;  %1167 = vmatprep.mubr.bf16.mxu0 %v2823_v6 }
  0xcb   : > { %2497 = vmatprep.subr.msk.bf16.mxu0 %vm285_vm1, %v1247_v49  ;;  %vm1406_vm1 = vcmask 1047556  }
  0xcc   : > { %vm1407_vm11 = vmor %vm1406_vm1, %vm1405_vm15 }
  0xce   : > { %2626 = vmatmul.mubr.msk.bf16.vlgmr.msra.gmra.mrb[28].mxu1 %vm281_vm3, %v2492_v50 }
  0xcf   : > { %2630 = vmatpush3.bf16.msra.mxu1 %v1258_v52  ;;  %2631 = vmatprep.mubr.msk.bf16.mxu1 %vm2822_vm0, %v2821_v3 }
  0xd0   : > { %2635 = vmatprep.subr.bf16.mxu1 %v2821_v3 }
  0xd1   : > { %2494 = vmatmul.mubr.msk.bf16.vlgmr.msra.gmra.mrb[28].mxu0 %vm281_vm3, %v2492_v50 }
  0xd2   : > { %1261 = vmatpush1.bf16.msra.mxu0 %v1252_v53  ;;  %1292 = vmatprep.mubr.bf16.mxu0 %v2823_v6 }
  0xd6   : > { %2632 = vmatmul.mubr.msk.bf16.vlgmr.msra.gmra.mrb[32].mxu1 %vm281_vm3, %v2496_v54 }
  0xd7   : > { %2637 = vmatprep.mubr.msk.bf16.mxu1 %vm2822_vm0, %v2821_v3 }
  0xd9   : > { %2498 = vmatmul.mubr.msk.bf16.vlgmr.msra.gmra.mrb[32].mxu0 %vm281_vm3, %v2496_v54  ;;  %vm1400_vm3 = vcmask 154624  }
  0xda   : > { %1480 = vmatprep.mubr.bf16.mxu0 %v2823_v6 }
 0x169   : > { %v370_v55 = vpop.f32.mrb[0].mxu1 }
 0x16a   : > { %v2585_v56 = vpop.f32.mrb[1].mxu1 }
 0x16b   : > { %v373_v57 = vpop.f32.mrb[2].mxu1 }
 0x16c   : > { %v329_v58 = vpop.f32.mrb[0].mxu0  ;;  %v2586_v59 = vpop.f32.mrb[3].mxu1 }
 0x16d   : > { %v331_v60 = vpop.f32.mrb[1].mxu0 }
 0x16e   : > { %v333_v61 = vpop.f32.mrb[2].mxu0 }
 0x16f   : > { %v334_v62 = vpop.f32.mrb[3].mxu0 }
 0x171   : > { %v463_v63 = vpop.f32.mrb[4].mxu1 }
 0x172   : > { %v464_v0 = vadd.f32 %v463_v63, %v370_v55  ;;  %v2591_v1 = vpop.f32.mrb[5].mxu1 }
 0x173   : > { %v466_v2 = vpop.f32.mrb[6].mxu1 }
 0x174   : > { %v422_v5 = vpop.f32.mrb[4].mxu0  ;;  %v2592_v7 = vpop.f32.mrb[7].mxu1 }
 0x175   : > { %v423_v8 = vadd.f32 %v422_v5, %v329_v58  ;;  %v424_v9 = vpop.f32.mrb[5].mxu0 }
 0x176   : > { %v425_v10 = vadd.f32 %v424_v9, %v331_v60  ;;  %v426_v11 = vpop.f32.mrb[6].mxu0 }
 0x177   : > { %v427_v12 = vpop.f32.mrb[7].mxu0 }
 0x179   : > { %v585_v13 = vpop.f32.mrb[8].mxu1 }
 0x17a   : > { %v593_v14 = vadd.f32 %v585_v13, %v464_v0  ;;  %v2597_v15 = vpop.f32.mrb[9].mxu1 }
 0x17b   : > { %v588_v16 = vpop.f32.mrb[10].mxu1 }
 0x17c   : > { %v544_v17 = vpop.f32.mrb[8].mxu0  ;;  %v2598_v18 = vpop.f32.mrb[11].mxu1 }
 0x17d   : > { %v591_v19 = vadd.f32 %v544_v17, %v423_v8  ;;  %v546_v20 = vpop.f32.mrb[9].mxu0 }
 0x17e   : > { %v592_v21 = vadd.f32 %v546_v20, %v425_v10  ;;  %v548_v22 = vpop.f32.mrb[10].mxu0 }
 0x17f   : > { %v549_v23 = vpop.f32.mrb[11].mxu0 }
 0x181   : > { %v710_v24 = vpop.f32.mrb[12].mxu1 }
 0x182   : > { %v718_v25 = vadd.f32 %v710_v24, %v593_v14  ;;  %v2603_v26 = vpop.f32.mrb[13].mxu1 }
 0x183   : > { %v713_v27 = vpop.f32.mrb[14].mxu1  ;;  %v1366_v26 = vsub.s32 0, %v2920_v4 }
 0x184   : > { %v669_v28 = vpop.f32.mrb[12].mxu0  ;;  %v2604_v29 = vpop.f32.mrb[15].mxu1 }
 0x185   : > { %v716_v30 = vadd.f32 %v669_v28, %v591_v19  ;;  %v671_v31 = vpop.f32.mrb[13].mxu0  ;;  %v1348_v19 = vpop.permute.xlu0 %1347  ;;  %v1370_v29 = vsub.s32 1, %v2920_v4 }
 0x186   : > { %v717_v32 = vadd.f32 %v671_v31, %v592_v21  ;;  %v673_v33 = vpop.f32.mrb[14].mxu0 }
 0x187   : > { %v674_v34 = vpop.f32.mrb[15].mxu0 }
 0x188   : > { %v1362_v34 = vld [vmem:[%s3334_s5] sm:$0x7] }
 0x189   : > { %v835_v35 = vpop.f32.mrb[16].mxu1 }
 0x18a   : > { %v843_v36 = vadd.f32 %v835_v35, %v718_v25  ;;  %v2609_v37 = vpop.f32.mrb[17].mxu1  ;;  %v1374_v35 = vsub.s32 2, %v2920_v4 }
 0x18b   : > { %v838_v38 = vpop.f32.mrb[18].mxu1 }
 0x18c   : > { %v794_v39 = vpop.f32.mrb[16].mxu0  ;;  %v2610_v40 = vpop.f32.mrb[19].mxu1  ;;  %v1367_v38 = vrot.slane %v1362_v34, %v1366_v26 }
 0x18d   : > { %v841_v41 = vadd.f32 %v794_v39, %v716_v30  ;;  %v796_v42 = vpop.f32.mrb[17].mxu0  ;;  %v1371_v40 = vrot.slane %v1362_v34, %v1370_v29 }
 0x18e   : > { %v842_v43 = vadd.f32 %v796_v42, %v717_v32  ;;  %v798_v44 = vpop.f32.mrb[18].mxu0 }
 0x18f   : > { %v799_v45 = vpop.f32.mrb[19].mxu0 }
 0x191   : > { %v960_v46 = vpop.f32.mrb[20].mxu1 }
 0x192   : > { %v968_v47 = vadd.f32 %v960_v46, %v843_v36  ;;  %v2615_v48 = vpop.f32.mrb[21].mxu1 }
 0x193   : > { %v963_v49 = vpop.f32.mrb[22].mxu1 }
 0x194   : > { %v919_v50 = vpop.f32.mrb[20].mxu0  ;;  %v2616_v51 = vpop.f32.mrb[23].mxu1 }
 0x195   : > { %v966_v52 = vadd.f32 %v919_v50, %v841_v41  ;;  %v921_v53 = vpop.f32.mrb[21].mxu0 }
 0x196   : > { %v967_v54 = vadd.f32 %v921_v53, %v842_v43  ;;  %v923_v55 = vpop.f32.mrb[22].mxu0  ;;  %v1375_v43 = vrot.slane %v1362_v34, %v1374_v35 }
 0x197   : > { %v924_v56 = vpop.f32.mrb[23].mxu0 }
 0x199   : > { %v1085_v57 = vpop.f32.mrb[24].mxu1 }
 0x19a   : > { %v1093_v58 = vadd.f32 %v1085_v57, %v968_v47  ;;  %v2621_v59 = vpop.f32.mrb[25].mxu1 }
 0x19b   : > { %v1088_v60 = vpop.f32.mrb[26].mxu1  ;;  %v2364_v59 = vld [vmem:[%s3333_s4] sm:$0xff] }
 0x19c   : > { %v1044_v61 = vpop.f32.mrb[24].mxu0  ;;  %v2622_v62 = vpop.f32.mrb[27].mxu1 }
 0x19d   : > { %v1091_v63 = vadd.f32 %v1044_v61, %v966_v52  ;;  %v1046_v0 = vpop.f32.mrb[25].mxu0 }
 0x19e   : > { %v1092_v1 = vadd.f32 %v1046_v0, %v967_v54  ;;  %v1048_v2 = vpop.f32.mrb[26].mxu0 }
 0x19f   : > { %v1049_v5 = vpop.f32.mrb[27].mxu0 }
 0x1a1   : > { %v1210_v7 = vpop.f32.mrb[28].mxu1 }
 0x1a2   : > { %v1218_v8 = vadd.f32 %v1210_v7, %v1093_v58  ;;  %v2627_v9 = vpop.f32.mrb[29].mxu1  ;;  %v2502_v7 = vld [vmem:[%s3332_s3 + $0x4] sm:$0xf] }
 0x1a3   : > { %v1213_v10 = vpop.f32.mrb[30].mxu1 }
 0x1a4   : > { %v1169_v11 = vpop.f32.mrb[28].mxu0  ;;  %v2628_v12 = vpop.f32.mrb[31].mxu1 }
 0x1a5   : > { %v1216_v13 = vadd.f32 %v1169_v11, %v1091_v63  ;;  %v1171_v14 = vpop.f32.mrb[29].mxu0 }
 0x1a6   : > { %v1217_v15 = vadd.f32 %v1171_v14, %v1092_v1  ;;  %v1173_v16 = vpop.f32.mrb[30].mxu0 }
 0x1a7   : > { %v1174_v17 = vpop.f32.mrb[31].mxu0 }
 0x1a9   : > { %v1335_v18 = vpop.f32.mrb[32].mxu1 }
 0x1aa   : > { %v1343_v20 = vadd.f32 %v1335_v18, %v1218_v8  ;;  %v2633_v21 = vpop.f32.mrb[33].mxu1 }
 0x1ab   : > { %v1338_v22 = vpop.f32.mrb[34].mxu1 }
 0x1ac   : > { %v1352_v23 = vadd.f32 %v1348_v19, %v1343_v20  ;;  %v1294_v24 = vpop.f32.mrb[32].mxu0  ;;  %v2634_v25 = vpop.f32.mrb[35].mxu1 }
 0x1ad   : > { %v1341_v27 = vadd.f32 %v1294_v24, %v1216_v13  ;;  %v1296_v28 = vpop.f32.mrb[33].mxu0  ;;  %v2512_v24 = vld [vmem:[%s3332_s3 + $0x8] sm:$0xf] }
 0x1ae   : > { %v1342_v30 = vadd.f32 %v1296_v28, %v1217_v15  ;;  %v1298_v31 = vpop.f32.mrb[34].mxu0  ;;  %v1358_v36 = vmul.f32 0.1, %v1352_v23  ;;  %vm1355_vm13 = vcmp.ge.f32.partialorder %v1352_v23, 0.0  ;;  %v1415_v15 = vld [vmem:[%s3332_s3] sm:$0xf] }
 0x1af   : > { %v1350_v32 = vadd.f32 %v1348_v19, %v1341_v27  ;;  %v1299_v33 = vpop.f32.mrb[35].mxu0 }
 0x1b0   : > { %v1351_v37 = vadd.f32 %v1348_v19, %v1342_v30  ;;  %v1361_v46 = vsel %vm1355_vm13, %v1352_v23, %v1358_v36  ;;  %vm1434_vm13 = vcmask 64512  }
 0x1b1   : > { %vm1353_vm12 = vcmp.ge.f32.partialorder %v1350_v32, 0.0  ;;  %v1356_v39 = vmul.f32 0.1, %v1350_v32  ;;  %v1381_v49 = vmul.f32 %v1375_v43, %v1361_v46 }
 0x1b2   : > { %vm1354_vm14 = vcmp.ge.f32.partialorder %v1351_v37, 0.0  ;;  %v1357_v41 = vmul.f32 0.1, %v1351_v37 }
 0x1b3   : > { %v1359_v42 = vsel %vm1353_vm12, %v1350_v32, %v1356_v39  ;;  %v2544_v4 = vpack.c.bf16 %v1381_v49, %v1381_v49  ;;  %vm1411_vm12 = vcmask 699800   ;;  %v2516_v32 = vld [vmem:[%s3332_s3 + $0xc] sm:$0xf] }
 0x1b4   : > { %v1360_v44 = vsel %vm1354_vm14, %v1351_v37, %v1357_v41  ;;  %v1379_v45 = vmul.f32 %v1367_v38, %v1359_v42 }
 0x1b5   : > { %v1380_v47 = vmul.f32 %v1371_v40, %v1360_v44  ;;  %v2520_v40 = vld [vmem:[%s3332_s3 + $0x10] sm:$0xf] }
 0x1b7   : > { %v2543_v48 = vpack.c.bf16 %v1380_v47, %v1379_v45  ;;  %v2524_v47 = vld [vmem:[%s3332_s3 + $0x14] sm:$0xf] }
 0x1b9   : > { %1395 = vrot.lane.b32.xlu1 %v2543_v48, %s2832_s29 }
 0x1bd   : > { %1397 = vrot.lane.b32.xlu1 %v2544_v4, %s2832_s29  ;;  %s2833_s29 = smov [#allocation3]  }
 0x22b   : > { %v1396_v50 = vpop.permute.xlu1 %1395 }
 0x22c   : > { %v1399_v51 = vrot.slane %v1396_v50, 4 }
 0x22e   : > { %v1401_v52 = vsel %vm1400_vm3, %v1399_v51, %v1396_v50 }
 0x22f   : > { %1408 = vst.msk [vmem:[#allocation2] sm:$0xff] %vm1407_vm11, %v1401_v52  ;;  %v1398_v53 = vpop.permute.xlu1 %1397 }
 0x230   : > { %v1402_v54 = vsel %vm1400_vm3, %v1399_v51, %v1398_v53  ;;  %v2528_v53 = vld [vmem:[%s3332_s3 + $0x18] sm:$0xf] }
 0x231   : > { %1410 = vst.msk [vmem:[#allocation2 + $0x8] sm:$0xf] %vm1409_vm10, %v1402_v54  ;;  %vm1438_vm10 = vcmask 1043456  }
 0x232   : > { %1412 = vst.msk [vmem:[#allocation2 + $0x8] sm:$0xf] %vm1411_vm12, %v2823_v6 }
 0x236   : > { %v1413_v55 = vld [vmem:[#allocation2] sm:$0xff] }
 0x237   : > { %v2503_v56 = vcombine.low %v1413_v55, %v1413_v55  ;;  %v2504_v57 = vcombine.high %v1413_v55, %v1413_v55 }
 0x239   : > { %v2755_v58 = vld [vmem:[#allocation2 + $0x8] ss:$0 sps:$4 sm:$0xff]   ;;  %1426 = vrot.lane.b32.xlu0 %v2503_v56, %s2824_s14  ;;  %1428 = vrot.lane.b32.xlu1 %v2504_v57, %s2824_s14  ;;  %v1533_v11 = vsel %vm1438_vm10, %v2503_v56, 0 }
 0x23a   : > { %v1539_v8 = vsel %vm1438_vm10, %v2755_v58, 0 }
 0x23d   : > { %1624 = vrot.lane.b32.xlu1 %v2503_v56, %s2825_s15  ;;  %1430 = vrot.lane.b32.xlu0 %v2755_v58, %s2824_s14  ;;  %s2760_s14 = sshll.u32 %s2833_s29, 4  ;;  %s2761_s14 = int_to_ptr.vmem [resolvable:$false] %s2760_s14 }
 0x241   : > { %1628 = vrot.lane.b32.xlu1 %v2755_v58, %s2825_s15  ;;  %1626 = vrot.lane.b32.xlu0 %v2504_v57, %s2825_s15  ;;  %s2762_s15 = scalar_lea.vmem %s2761_s14, 768 }
 0x245   : > { %1732 = vrot.lane.b32.xlu1 %v2504_v57, %s2826_s16  ;;  %1730 = vrot.lane.b32.xlu0 %v2503_v56, %s2826_s16 }
 0x249   : > { %1836 = vrot.lane.b32.xlu1 %v2503_v56, %s2827_s17  ;;  %1734 = vrot.lane.b32.xlu0 %v2755_v58, %s2826_s16 }
 0x24d   : > { %1840 = vrot.lane.b32.xlu1 %v2755_v58, %s2827_s17  ;;  %1838 = vrot.lane.b32.xlu0 %v2504_v57, %s2827_s17 }
 0x251   : > { %1944 = vrot.lane.b32.xlu1 %v2504_v57, %s2828_s18  ;;  %1942 = vrot.lane.b32.xlu0 %v2503_v56, %s2828_s18 }
 0x255   : > { %2048 = vrot.lane.b32.xlu1 %v2503_v56, %s2829_s19  ;;  %1946 = vrot.lane.b32.xlu0 %v2755_v58, %s2828_s18 }
 0x259   : > { %2052 = vrot.lane.b32.xlu1 %v2755_v58, %s2829_s19  ;;  %2050 = vrot.lane.b32.xlu0 %v2504_v57, %s2829_s19  ;;  %s242_s19 = sand.u32 1, %s2810_s22  }
 0x25d   : > { %2156 = vrot.lane.b32.xlu1 %v2504_v57, %s2830_s20  ;;  %2154 = vrot.lane.b32.xlu0 %v2503_v56, %s2830_s20 }
 0x261   : > { %2260 = vrot.lane.b32.xlu1 %v2503_v56, %s2831_s26  ;;  %2158 = vrot.lane.b32.xlu0 %v2755_v58, %s2830_s20  ;;  %s2689_s20 = smul.u32 24, %s242_s19 }
 0x263   : > { %s244_s9 = scalar_lea.vmem [#allocation3], %s2689_s20 }
 0x264   : > { %s2401_s10 = sshll.u32 %s244_s9, 4  ;;  %s3287_s10 = int_to_ptr.vmem [resolvable:$true] %s2401_s10 }
 0x265   : > { %2264 = vrot.lane.b32.xlu1 %v2755_v58, %s2831_s26  ;;  %2262 = vrot.lane.b32.xlu0 %v2504_v57, %s2831_s26  ;;  %s2691_s26 = smul.u32 384, %s2890_s25  ;;  %s2387_s25 = scalar_lea.sflag [#allocation4], %s242_s19 }
 0x266   : > { %s2756_s28 = scalar_lea.vmem %s3287_s10, 384  ;;  %p2763_p0 = scmp.lt.s32.totalorder %s3287_s10, %s2761_s14 }
 0x267   : > { %s3285_s13 = scalar_lea.hbm %s3335_s6, %s2691_s26  ;;  %p2757_p11 = scmp.ne.s32.totalorder %s3287_s10, %s2756_s28 }
 0x268   : > { %p2764_p1 = scmp.lt.s32.totalorder %s2762_s15, %s2756_s28 }
 0x269   : > { %2367 = vperm.xlu0 %2744, %v2364_v59   ;;  %p2758_p12 = pnand %p2757_p11, %p2907_p5 }
 0x26a   : > { %p2765_p2 = por %p2764_p1, %p2763_p0 }
 0x26b   : > { %p2759_p13 = pneg %p2758_p12 }
 0x26d   : > { %p2766_p3 = pnand %p2765_p2, %p2759_p13 }
 0x2ab   : > { %v1427_v60 = vpop.permute.xlu0 %1426  ;;  %v1429_v61 = vpop.permute.xlu1 %1428 }
 0x2ac   : > { %v1432_v62 = vsel %vm278_vm2, %v1427_v60, %v1429_v61  ;;  %v2532_v60 = vld [vmem:[%s3332_s3 + $0x1c] sm:$0xf] }
 0x2ad   : > { %v1440_v5 = vsel %vm1438_vm10, %v1432_v62, 0 }
 0x2af   : > { %v1431_v63 = vpop.permute.xlu0 %1430  ;;  %v1625_v0 = vpop.permute.xlu1 %1624 }
 0x2b0   : > { %v1433_v1 = vsel %vm278_vm2, %v1429_v61, %v1431_v63  ;;  %v1446_v2 = vsel %vm1438_vm10, %v1431_v63, 0  ;;  %vm3339_vm2 = vcmask 736256  }
 0x2b1   : > { %2506 = vmatprep.subr.msk.bf16.mxu0 %vm1438_vm10, %v1433_v1  ;;  %2636 = vmatpush3.bf16.msra.mxu1 %v1446_v2 }
 0x2b2   : > { %1449 = vmatpush1.bf16.msra.mxu0 %v1440_v5  ;;  %2641 = vmatprep.subr.bf16.mxu1 %v2821_v3 }
 0x2b3   : > { %v1627_v9 = vpop.permute.xlu0 %1626  ;;  %2509 = vmatprep.subr.msk.bf16.mxu0 %vm1438_vm10, %v2504_v57  ;;  %v1629_v10 = vpop.permute.xlu1 %1628 }
 0x2b4   : > { %2638 = vmatmul.mubr.msk.bf16.vlgmr.msra.gmra.mrb[36].mxu1 %vm1434_vm13, %v2502_v7  ;;  %v1631_v12 = vsel %vm495_vm4, %v1627_v9, %v1629_v10  ;;  %v1630_v16 = vsel %vm495_vm4, %v1625_v0, %v1627_v9  ;;  %v1642_v17 = vsel %vm1438_vm10, %v1629_v10, 0  ;;  %vm3340_vm4 = vmmov %vm3339_vm2  ;;  %v2536_v0 = vld [vmem:[%s3332_s3 + $0x20] sm:$0xf] }
 0x2b5   : > { %2507 = vmatmul.mubr.msk.bf16.vlgmr.msra.gmra.mrb[36].mxu0 %vm1434_vm13, %v2502_v7  ;;  %2642 = vmatpush3.bf16.msra.mxu1 %v1539_v8  ;;  %v1636_v21 = vsel %vm1438_vm10, %v1630_v16, 0 }
 0x2b6   : > { %1542 = vmatpush1.bf16.msra.mxu0 %v1533_v11  ;;  %2643 = vmatprep.mubr.msk.bf16.mxu1 %vm2822_vm0, %v2821_v3 }
 0x2b7   : > { %v1731_v13 = vpop.permute.xlu0 %1730  ;;  %2513 = vmatprep.subr.msk.bf16.mxu0 %vm1438_vm10, %v1631_v12  ;;  %v1733_v14 = vpop.permute.xlu1 %1732  ;;  %1573 = vmatprep.mubr.bf16.mxu0 %v2823_v6 }
 0x2b8   : > { %2647 = vmatprep.subr.bf16.mxu1 %v2821_v3  ;;  %v1736_v25 = vsel %vm620_vm5, %v1731_v13, %v1733_v14 }
 0x2b9   : > { %v1742_v28 = vsel %vm1438_vm10, %v1736_v25, 0 }
 0x2bb   : > { %v1735_v18 = vpop.permute.xlu0 %1734  ;;  %v1837_v19 = vpop.permute.xlu1 %1836 }
 0x2bc   : > { %v1737_v20 = vsel %vm620_vm5, %v1733_v14, %v1735_v18  ;;  %2644 = vmatmul.mubr.msk.bf16.vlgmr.msra.gmra.mrb[40].mxu1 %vm1434_vm13, %v1415_v15  ;;  %v1748_v26 = vsel %vm1438_vm10, %v1735_v18, 0  ;;  %vm2384_vm5 = vcmask 261120  }
 0x2bd   : > { %2510 = vmatmul.mubr.msk.bf16.vlgmr.msra.gmra.mrb[40].mxu0 %vm1434_vm13, %v1415_v15  ;;  %2648 = vmatpush3.bf16.msra.mxu1 %v1642_v17 }
 0x2be   : > { %1645 = vmatpush1.bf16.msra.mxu0 %v1636_v21  ;;  %2649 = vmatprep.mubr.msk.bf16.mxu1 %vm2822_vm0, %v2821_v3 }
 0x2bf   : > { %2517 = vmatprep.subr.msk.bf16.mxu0 %vm1438_vm10, %v1737_v20  ;;  %v1839_v22 = vpop.permute.xlu0 %1838  ;;  %v1841_v23 = vpop.permute.xlu1 %1840  ;;  %1676 = vmatprep.mubr.bf16.mxu0 %v2823_v6 }
 0x2c0   : > { %2653 = vmatprep.subr.bf16.mxu1 %v2821_v3  ;;  %v1843_v30 = vsel %vm745_vm6, %v1839_v22, %v1841_v23  ;;  %v1842_v33 = vsel %vm745_vm6, %v1837_v19, %v1839_v22  ;;  %v1854_v34 = vsel %vm1438_vm10, %v1841_v23, 0 }
 0x2c1   : > { %v1848_v36 = vsel %vm1438_vm10, %v1842_v33, 0 }
 0x2c3   : > { %v1943_v27 = vpop.permute.xlu0 %1942  ;;  %v1945_v29 = vpop.permute.xlu1 %1944 }
 0x2c4   : > { %2650 = vmatmul.mubr.msk.bf16.vlgmr.msra.gmra.mrb[44].mxu1 %vm1434_vm13, %v2512_v24  ;;  %v1948_v41 = vsel %vm870_vm7, %v1943_v27, %v1945_v29 }
 0x2c5   : > { %2514 = vmatmul.mubr.msk.bf16.vlgmr.msra.gmra.mrb[44].mxu0 %vm1434_vm13, %v2512_v24  ;;  %2654 = vmatpush3.bf16.msra.mxu1 %v1748_v26  ;;  %v1954_v43 = vsel %vm1438_vm10, %v1948_v41, 0 }
 0x2c6   : > { %1751 = vmatpush1.bf16.msra.mxu0 %v1742_v28  ;;  %2655 = vmatprep.mubr.msk.bf16.mxu1 %vm2822_vm0, %v2821_v3 }
 0x2c7   : > { %2521 = vmatprep.subr.msk.bf16.mxu0 %vm1438_vm10, %v1843_v30  ;;  %1782 = vmatprep.mubr.bf16.mxu0 %v2823_v6  ;;  %v1947_v31 = vpop.permute.xlu0 %1946  ;;  %v2049_v35 = vpop.permute.xlu1 %2048 }
 0x2c8   : > { %2659 = vmatprep.subr.bf16.mxu1 %v2821_v3  ;;  %v1949_v37 = vsel %vm870_vm7, %v1945_v29, %v1947_v31  ;;  %v1960_v42 = vsel %vm1438_vm10, %v1947_v31, 0 }
 0x2cb   : > { %v2051_v38 = vpop.permute.xlu0 %2050  ;;  %v2053_v39 = vpop.permute.xlu1 %2052 }
 0x2cc   : > { %2656 = vmatmul.mubr.msk.bf16.vlgmr.msra.gmra.mrb[48].mxu1 %vm1434_vm13, %v2516_v32  ;;  %v2055_v45 = vsel %vm995_vm8, %v2051_v38, %v2053_v39  ;;  %v2054_v48 = vsel %vm995_vm8, %v2049_v35, %v2051_v38  ;;  %v2066_v49 = vsel %vm1438_vm10, %v2053_v39, 0 }
 0x2cd   : > { %2518 = vmatmul.mubr.msk.bf16.vlgmr.msra.gmra.mrb[48].mxu0 %vm1434_vm13, %v2516_v32  ;;  %2660 = vmatpush3.bf16.msra.mxu1 %v1854_v34  ;;  %v2060_v50 = vsel %vm1438_vm10, %v2054_v48, 0 }
 0x2ce   : > { %1857 = vmatpush1.bf16.msra.mxu0 %v1848_v36  ;;  %2661 = vmatprep.mubr.msk.bf16.mxu1 %vm2822_vm0, %v2821_v3 }
 0x2cf   : > { %2525 = vmatprep.subr.msk.bf16.mxu0 %vm1438_vm10, %v1949_v37  ;;  %1888 = vmatprep.mubr.bf16.mxu0 %v2823_v6  ;;  %v2155_v44 = vpop.permute.xlu0 %2154  ;;  %v2157_v46 = vpop.permute.xlu1 %2156 }
 0x2d0   : > { %2665 = vmatprep.subr.bf16.mxu1 %v2821_v3  ;;  %v2160_v54 = vsel %vm1120_vm9, %v2155_v44, %v2157_v46 }
 0x2d1   : > { %v2166_v58 = vsel %vm1438_vm10, %v2160_v54, 0 }
 0x2d3   : > { %v2159_v4 = vpop.permute.xlu0 %2158  ;;  %v2261_v51 = vpop.permute.xlu1 %2260 }
 0x2d4   : > { %2662 = vmatmul.mubr.msk.bf16.vlgmr.msra.gmra.mrb[52].mxu1 %vm1434_vm13, %v2520_v40  ;;  %v2161_v52 = vsel %vm1120_vm9, %v2157_v46, %v2159_v4  ;;  %v2172_v55 = vsel %vm1438_vm10, %v2159_v4, 0 }
 0x2d5   : > { %2522 = vmatmul.mubr.msk.bf16.vlgmr.msra.gmra.mrb[52].mxu0 %vm1434_vm13, %v2520_v40  ;;  %2666 = vmatpush3.bf16.msra.mxu1 %v1960_v42 }
 0x2d6   : > { %1963 = vmatpush1.bf16.msra.mxu0 %v1954_v43  ;;  %2667 = vmatprep.mubr.msk.bf16.mxu1 %vm2822_vm0, %v2821_v3 }
 0x2d7   : > { %2529 = vmatprep.subr.msk.bf16.mxu0 %vm1438_vm10, %v2055_v45  ;;  %1994 = vmatprep.mubr.bf16.mxu0 %v2823_v6  ;;  %v2263_v56 = vpop.permute.xlu0 %2262  ;;  %v2265_v57 = vpop.permute.xlu1 %2264 }
 0x2d8   : > { %2671 = vmatprep.subr.bf16.mxu1 %v2821_v3  ;;  %v2267_v59 = vsel %vm3339_vm2, %v2263_v56, %v2265_v57  ;;  %v2266_v61 = vsel %vm3340_vm4, %v2261_v51, %v2263_v56  ;;  %v2278_v62 = vsel %vm1438_vm10, %v2265_v57, 0 }
 0x2d9   : > { %v2272_v63 = vsel %vm1438_vm10, %v2266_v61, 0 }
 0x2dc   : > { %2668 = vmatmul.mubr.msk.bf16.vlgmr.msra.gmra.mrb[56].mxu1 %vm1434_vm13, %v2524_v47 }
 0x2dd   : > { %2526 = vmatmul.mubr.msk.bf16.vlgmr.msra.gmra.mrb[56].mxu0 %vm1434_vm13, %v2524_v47  ;;  %2672 = vmatpush3.bf16.msra.mxu1 %v2066_v49 }
 0x2de   : > { %2069 = vmatpush1.bf16.msra.mxu0 %v2060_v50  ;;  %2673 = vmatprep.mubr.msk.bf16.mxu1 %vm2822_vm0, %v2821_v3 }
 0x2df   : > { %2533 = vmatprep.subr.msk.bf16.mxu0 %vm1438_vm10, %v2161_v52  ;;  %2100 = vmatprep.mubr.bf16.mxu0 %v2823_v6 }
 0x2e0   : > { %2677 = vmatprep.subr.bf16.mxu1 %v2821_v3 }
 0x2e4   : > { %2674 = vmatmul.mubr.msk.bf16.vlgmr.msra.gmra.mrb[60].mxu1 %vm1434_vm13, %v2528_v53 }
 0x2e5   : > { %2530 = vmatmul.mubr.msk.bf16.vlgmr.msra.gmra.mrb[60].mxu0 %vm1434_vm13, %v2528_v53  ;;  %2678 = vmatpush3.bf16.msra.mxu1 %v2172_v55 }
 0x2e6   : > { %2175 = vmatpush1.bf16.msra.mxu0 %v2166_v58  ;;  %2679 = vmatprep.mubr.msk.bf16.mxu1 %vm2822_vm0, %v2821_v3 }
 0x2e7   : > { %2537 = vmatprep.subr.msk.bf16.mxu0 %vm1438_vm10, %v2267_v59  ;;  %2206 = vmatprep.mubr.bf16.mxu0 %v2823_v6 }
 0x2e8   : > { %2683 = vmatprep.subr.bf16.mxu1 %v2821_v3 }
 0x2ec   : > { %2680 = vmatmul.mubr.msk.bf16.vlgmr.msra.gmra.mrb[64].mxu1 %vm1434_vm13, %v2532_v60 }
 0x2ed   : > { %2534 = vmatmul.mubr.msk.bf16.vlgmr.msra.gmra.mrb[64].mxu0 %vm1434_vm13, %v2532_v60  ;;  %2684 = vmatpush3.bf16.msra.mxu1 %v2278_v62 }
 0x2ee   : > { %2281 = vmatpush1.bf16.msra.mxu0 %v2272_v63  ;;  %2685 = vmatprep.mubr.msk.bf16.mxu1 %vm2822_vm0, %v2821_v3 }
 0x2ef   : > { %2312 = vmatprep.mubr.bf16.mxu0 %v2823_v6 }
 0x2f4   : > { %2686 = vmatmul.mubr.msk.bf16.vlgmr.msra.gmra.mrb[68].mxu1 %vm1434_vm13, %v2536_v0 }
 0x2f5   : > { %2538 = vmatmul.mubr.msk.bf16.vlgmr.msra.gmra.mrb[68].mxu0 %vm1434_vm13, %v2536_v0 }
 0x387   : > { %v1523_v1 = vpop.f32.mrb[36].mxu1 }
 0x388   : > { %v1482_v2 = vpop.f32.mrb[36].mxu0  ;;  %v2639_v5 = vpop.f32.mrb[37].mxu1 }
 0x389   : > { %v1484_v7 = vpop.f32.mrb[37].mxu0  ;;  %v1526_v8 = vpop.f32.mrb[38].mxu1 }
 0x38a   : > { %v1486_v9 = vpop.f32.mrb[38].mxu0  ;;  %v2640_v10 = vpop.f32.mrb[39].mxu1 }
 0x38b   : > { %v1487_v11 = vpop.f32.mrb[39].mxu0 }
 0x38f   : > { %v1616_v12 = vpop.f32.mrb[40].mxu1 }
 0x390   : > { %v1617_v3 = vadd.f32 %v1616_v12, %v1523_v1  ;;  %v1575_v13 = vpop.f32.mrb[40].mxu0  ;;  %v2645_v6 = vpop.f32.mrb[41].mxu1 }
 0x391   : > { %v1576_v14 = vadd.f32 %v1575_v13, %v1482_v2  ;;  %v1577_v15 = vpop.f32.mrb[41].mxu0  ;;  %v1619_v16 = vpop.f32.mrb[42].mxu1 }
 0x392   : > { %v1578_v17 = vadd.f32 %v1577_v15, %v1484_v7  ;;  %v1579_v18 = vpop.f32.mrb[42].mxu0  ;;  %v2646_v19 = vpop.f32.mrb[43].mxu1 }
 0x393   : > { %v1580_v20 = vpop.f32.mrb[43].mxu0 }
 0x397   : > { %v1719_v21 = vpop.f32.mrb[44].mxu1 }
 0x398   : > { %v1727_v22 = vadd.f32 %v1719_v21, %v1617_v3  ;;  %v1678_v23 = vpop.f32.mrb[44].mxu0  ;;  %v2651_v24 = vpop.f32.mrb[45].mxu1 }
 0x399   : > { %v1725_v25 = vadd.f32 %v1678_v23, %v1576_v14  ;;  %v1680_v26 = vpop.f32.mrb[45].mxu0  ;;  %v1722_v27 = vpop.f32.mrb[46].mxu1 }
 0x39a   : > { %v1726_v28 = vadd.f32 %v1680_v26, %v1578_v17  ;;  %v1682_v29 = vpop.f32.mrb[46].mxu0  ;;  %v2652_v30 = vpop.f32.mrb[47].mxu1 }
 0x39b   : > { %v1683_v31 = vpop.f32.mrb[47].mxu0  ;;  %v2368_v23 = vpop.permute.xlu0 %2367 }
 0x39f   : > { %v1825_v32 = vpop.f32.mrb[48].mxu1 }
 0x3a0   : > { %v1833_v33 = vadd.f32 %v1825_v32, %v1727_v22  ;;  %v1784_v34 = vpop.f32.mrb[48].mxu0  ;;  %v2657_v35 = vpop.f32.mrb[49].mxu1 }
 0x3a1   : > { %v1831_v36 = vadd.f32 %v1784_v34, %v1725_v25  ;;  %v1786_v37 = vpop.f32.mrb[49].mxu0  ;;  %v1828_v38 = vpop.f32.mrb[50].mxu1 }
 0x3a2   : > { %v1832_v39 = vadd.f32 %v1786_v37, %v1726_v28  ;;  %v1788_v40 = vpop.f32.mrb[50].mxu0  ;;  %v2658_v41 = vpop.f32.mrb[51].mxu1 }
 0x3a3   : > { %v1789_v42 = vpop.f32.mrb[51].mxu0 }
 0x3a7   : > { %v1931_v43 = vpop.f32.mrb[52].mxu1 }
 0x3a8   : > { %v1939_v44 = vadd.f32 %v1931_v43, %v1833_v33  ;;  %v1890_v45 = vpop.f32.mrb[52].mxu0  ;;  %v2663_v46 = vpop.f32.mrb[53].mxu1 }
 0x3a9   : > { %v1937_v47 = vadd.f32 %v1890_v45, %v1831_v36  ;;  %v1892_v48 = vpop.f32.mrb[53].mxu0  ;;  %v1934_v49 = vpop.f32.mrb[54].mxu1 }
 0x3aa   : > { %v1938_v4 = vadd.f32 %v1892_v48, %v1832_v39  ;;  %v1894_v50 = vpop.f32.mrb[54].mxu0  ;;  %v2664_v51 = vpop.f32.mrb[55].mxu1 }
 0x3ab   : > { %v1895_v52 = vpop.f32.mrb[55].mxu0 }
 0x3af   : > { %v2037_v53 = vpop.f32.mrb[56].mxu1 }
 0x3b0   : > { %v2045_v54 = vadd.f32 %v2037_v53, %v1939_v44  ;;  %v1996_v55 = vpop.f32.mrb[56].mxu0  ;;  %v2669_v56 = vpop.f32.mrb[57].mxu1 }
 0x3b1   : > { %v2043_v57 = vadd.f32 %v1996_v55, %v1937_v47  ;;  %v1998_v58 = vpop.f32.mrb[57].mxu0  ;;  %v2040_v59 = vpop.f32.mrb[58].mxu1 }
 0x3b2   : > { %v2044_v60 = vadd.f32 %v1998_v58, %v1938_v4  ;;  %v2000_v61 = vpop.f32.mrb[58].mxu0  ;;  %v2670_v62 = vpop.f32.mrb[59].mxu1 }
 0x3b3   : > { %v2001_v63 = vpop.f32.mrb[59].mxu0 }
 0x3b7   : > { %v2143_v0 = vpop.f32.mrb[60].mxu1 }
 0x3b8   : > { %v2151_v1 = vadd.f32 %v2143_v0, %v2045_v54  ;;  %v2102_v2 = vpop.f32.mrb[60].mxu0  ;;  %v2675_v5 = vpop.f32.mrb[61].mxu1 }
 0x3b9   : > { %v2149_v7 = vadd.f32 %v2102_v2, %v2043_v57  ;;  %v2104_v8 = vpop.f32.mrb[61].mxu0  ;;  %v2146_v9 = vpop.f32.mrb[62].mxu1 }
 0x3ba   : > { %v2150_v10 = vadd.f32 %v2104_v8, %v2044_v60  ;;  %v2106_v11 = vpop.f32.mrb[62].mxu0  ;;  %v2676_v12 = vpop.f32.mrb[63].mxu1 }
 0x3bb   : > { %v2107_v3 = vpop.f32.mrb[63].mxu0 }
 0x3bf   : > { %v2249_v13 = vpop.f32.mrb[64].mxu1 }
 0x3c0   : > { %v2257_v6 = vadd.f32 %v2249_v13, %v2151_v1  ;;  %v2208_v14 = vpop.f32.mrb[64].mxu0  ;;  %v2681_v15 = vpop.f32.mrb[65].mxu1 }
 0x3c1   : > { %v2255_v16 = vadd.f32 %v2208_v14, %v2149_v7  ;;  %v2210_v17 = vpop.f32.mrb[65].mxu0  ;;  %v2252_v18 = vpop.f32.mrb[66].mxu1 }
 0x3c2   : > { %v2256_v19 = vadd.f32 %v2210_v17, %v2150_v10  ;;  %v2212_v20 = vpop.f32.mrb[66].mxu0  ;;  %v2682_v21 = vpop.f32.mrb[67].mxu1 }
 0x3c3   : > { %v2213_v22 = vpop.f32.mrb[67].mxu0 }
 0x3c7   : > { %v2355_v24 = vpop.f32.mrb[68].mxu1 }
 0x3c8   : > { %v2363_v25 = vadd.f32 %v2355_v24, %v2257_v6  ;;  %v2314_v26 = vpop.f32.mrb[68].mxu0  ;;  %v2687_v27 = vpop.f32.mrb[69].mxu1 }
 0x3c9   : > { %v2361_v28 = vadd.f32 %v2314_v26, %v2255_v16  ;;  %v2316_v29 = vpop.f32.mrb[69].mxu0  ;;  %v2358_v30 = vpop.f32.mrb[70].mxu1 }
 0x3ca   : > { %v2372_v31 = vadd.f32 %v2368_v23, %v2363_v25  ;;  %v2362_v32 = vadd.f32 %v2316_v29, %v2256_v19  ;;  %v2318_v33 = vpop.f32.mrb[70].mxu0  ;;  %v2688_v34 = vpop.f32.mrb[71].mxu1 }
 0x3cb   : > { %v2370_v35 = vadd.f32 %v2368_v23, %v2361_v28  ;;  %v2319_v36 = vpop.f32.mrb[71].mxu0 }
 0x3cc   : > { %vm2375_vm0 = vcmp.ge.f32.partialorder %v2372_v31, 0.0  ;;  %v2378_v37 = vmul.f32 0.1, %v2372_v31  ;;  %v2371_v38 = vadd.f32 %v2368_v23, %v2362_v32 }
 0x3cd   : > { %vm2373_vm6 = vcmp.ge.f32.partialorder %v2370_v35, 0.0  ;;  %v2376_v39 = vmul.f32 0.1, %v2370_v35 }
 0x3ce   : > { %v2381_v40 = vsel %vm2375_vm0, %v2372_v31, %v2378_v37  ;;  %vm2374_vm7 = vcmp.ge.f32.partialorder %v2371_v38, 0.0  ;;  %v2377_v41 = vmul.f32 0.1, %v2371_v38 }
 0x3cf   : > { %v2379_v42 = vsel %vm2373_vm6, %v2370_v35, %v2376_v39  ;;  %2385 = vst.msk [vmem:[%s244_s9 + $0x10] sm:$0xff] %vm2384_vm5, %v2381_v40 }
 0x3d0   : > { %2382 = vst [vmem:[%s244_s9] sm:$0xff] %v2379_v42  ;;  %v2380_v43 = vsel %vm2374_vm7, %v2371_v38, %v2377_v41 }
 0x3d1   : > { %2383 = vst [vmem:[%s244_s9 + $0x8] sm:$0xff] %v2380_v43 }
 0x3d2   : > { %2769 = shalt.err (!%p2766_p3)
}
 0x3d3   : > { %s2770_s16 = scalar_lea.hbm %s3285_s13, 384  ;;  %s2774_s19 = scalar_lea.hbm %s3335_s6, 768 }
 0x3d4   : > { %p2771_p4 = scmp.ne.s32.totalorder %s3285_s13, %s2770_s16  ;;  %p2775_p9 = scmp.lt.u32.totalorder %s3285_s13, %s3335_s6 }
 0x3d5   : > { %p2776_p10 = scmp.lt.u32.totalorder %s2774_s19, %s2770_s16  ;;  %p2778_p12 = scmp.lt.u32.totalorder %s2770_s16, %s3285_s13 }
 0x3d6   : > { %p2772_p7 = pnand %p2771_p4, %p2907_p5 }
 0x3d7   : > { %p2777_p11 = por %p2776_p10, %p2775_p9 }
 0x3d8   : > { %p2773_p8 = pneg %p2772_p7 }
 0x3d9   : > { %p2779_p13 = por %p2778_p12, %p2777_p11 }
 0x3db   : > { %p2780_p0 = pnand %p2779_p13, %p2773_p8 }
 0x3dd   : > { %2783 = shalt.err (!%p2780_p0)
}
 0x3de   : > { %2692 = dma.vmem_to_hbm [thread:$0]  (%p2907_p5), %s3287_s10, 384, %s3285_s13, %s2387_s25  }
 0x3df PF: > { %p2698_p1 = scmp.ge.s32.totalorder %s2818_s24, 2  ;;  %s2413_s9 = sand.u32 1, %s2806_s21  }
 0x3e0   : > { %s2414_s11 = scalar_lea.sflag [#allocation4], %s2413_s9 }
 0x3e1   : > { %p2695_p2 = pnand %p2698_p1, %p2911_p6 }
 0x3e3   : > { %2801 = dma.done.wait (!%p2695_p2), %s2414_s11, 384  }
 0x3e4   : > { %2803 = vsyncadd (!%p2695_p2), %s2414_s11, 4294966912  ;;  %p16_p3 = scmp.ge.s32.totalorder %s2894_s27, 4   ;;  %s3341_s21 = smov %s2810_s22 }
 0x3e5   : > { %s3342_s22 = smov %s2814_s23  ;;  %s3343_s23 = smov %s2905_s30 }
 0x3e6   : > { %s3344_s24 = smov %s2894_s27  ;;  %18 = sbr.rel (!%p16_p3) target bundleno = 3 (0x3), region = 95 }
 0x3ed   :  { %2419 = vsyncpa [#allocation4], 1 }
 0x3ee   :  { %2421 = vsyncpa [#allocation4 + $0x1], 1 }

</bundles_post_ra>
